<compile_context>
chip_gen: v5e
topology: v5e:2x2
jax: 0.10.0
libtpu: 0.0.40
codegen_flags: <defaults>
</compile_context>

<pallas_src>
import jax
import jax.numpy as jnp
import numpy as np
from jax.experimental import pallas as pl
from jax.experimental.pallas import tpu as pltpu

LANE = 128


def _round_up(n, m):
    return ((n + m - 1) // m) * m


def _tensorcores_per_chip():
    """How many grid steps to use so every TensorCore on the chip gets one tile."""
    try:
        kind = jax.devices()[0].device_kind.lower()
    except Exception:
        return 1
    if "v7" in kind or "7x" in kind:
        return 2          # v7x: 2 TensorCores per chip
    if "v5p" in kind or "v4" in kind:
        return 2          # megacore parts: 2 TCs share "parallel" grid axes
    return 1              # v5e / v6e: single TensorCore -> single grid step


def mlp_kernel(x_ref,
               w1_ref, b1_ref,
               w2_ref, b2_ref,
               w3_ref, b3_ref,
               w4_ref, b4_ref,
               o_ref):
    cd = w1_ref.dtype                      # matmul operand dtype (bf16)
    x = x_ref[...].astype(cd)              # single cast per batch tile

    # Layer 1: Linear (BN folded in) -> ReLU   (Dropout = identity in eval)
    h = jnp.dot(x, w1_ref[...], preferred_element_type=jnp.float32) + b1_ref[...]
    h = jnp.maximum(h, 0.0)

    # Layer 2
    h = jnp.dot(h.astype(cd), w2_ref[...], preferred_element_type=jnp.float32) + b2_ref[...]
    h = jnp.maximum(h, 0.0)

    # Layer 3 (output padded 64 -> 128 lanes; padded columns are exactly zero)
    h = jnp.dot(h.astype(cd), w3_ref[...], preferred_element_type=jnp.float32) + b3_ref[...]
    h = jnp.maximum(h, 0.0)

    # Final classifier (num_classes padded to 128 lanes -> unmasked lane-dense vst)
    out = jnp.dot(h.astype(cd), w4_ref[...], preferred_element_type=jnp.float32) + b4_ref[...]
    o_ref[...] = out.astype(o_ref.dtype)   # bf16 store -> half the writeback bytes


def init_params(key, input_dim, num_classes):
    """Deterministic init matching PyTorch defaults. Linear: U(-1/sqrt(fan_in),
    1/sqrt(fan_in)). BatchNorm1d (eval): gamma=1, beta=0, running_mean=0,
    running_var=1, eps=1e-5 -> stored as per-feature scale/shift (s, t)."""
    dims = [input_dim, 256, 128, 64, num_classes]
    eps = 1e-5
    params = {}
    keys = jax.random.split(key, 8)
    for li, (din, dout) in enumerate(zip(dims[:-1], dims[1:]), start=1):
        bound = 1.0 / np.sqrt(din)
        params[f"w{li}"] = jax.random.uniform(keys[2 * li - 2], (din, dout),
                                              jnp.float32, -bound, bound)
        params[f"b{li}"] = jax.random.uniform(keys[2 * li - 1], (1, dout),
                                              jnp.float32, -bound, bound)
        if li < 4:  # hidden layers have BatchNorm1d
            gamma = jnp.ones((1, dout), jnp.float32)
            beta = jnp.zeros((1, dout), jnp.float32)
            running_mean = jnp.zeros((1, dout), jnp.float32)
            running_var = jnp.ones((1, dout), jnp.float32)
            scale = gamma / jnp.sqrt(running_var + eps)
            shift = beta - running_mean * scale
            params[f"s{li}"] = scale
            params[f"t{li}"] = shift
    return params


def fold_and_pad_params(params, *, compute_dtype=jnp.bfloat16):
    """Fold the eval-mode BN affine into the Linear weights/biases, pad the small
    N dims (64 hidden, num_classes) up to 128 lanes, and cast matmul operands to
    `compute_dtype` (biases stay f32 for the f32 epilogue)."""
    def fold(w, b, s, t):
        return w * s, b * s + t            # column-scale weights, affine the bias

    w1, b1 = fold(params["w1"], params["b1"], params["s1"], params["t1"])
    w2, b2 = fold(params["w2"], params["b2"], params["s2"], params["t2"])
    w3, b3 = fold(params["w3"], params["b3"], params["s3"], params["t3"])
    w4, b4 = params["w4"], params["b4"]

    # Pad layer-3 output (64) and the classifier output (num_classes) to lane width.
    n3, n3p = w3.shape[1], _round_up(w3.shape[1], LANE)
    c, cp = w4.shape[1], _round_up(w4.shape[1], LANE)
    w3 = jnp.pad(w3, ((0, 0), (0, n3p - n3)))
    b3 = jnp.pad(b3, ((0, 0), (0, n3p - n3)))
    w4 = jnp.pad(w4, ((0, n3p - n3), (0, cp - c)))   # zero rows for padded h3 lanes
    b4 = jnp.pad(b4, ((0, 0), (0, cp - c)))

    return {
        "w1": w1.astype(compute_dtype), "b1": b1.astype(jnp.float32),
        "w2": w2.astype(compute_dtype), "b2": b2.astype(jnp.float32),
        "w3": w3.astype(compute_dtype), "b3": b3.astype(jnp.float32),
        "w4": w4.astype(compute_dtype), "b4": b4.astype(jnp.float32),
    }


def simple_nn_forward(x, kparams, num_classes, *, num_batch_splits=None):
    """x: [B, input_dim] f32. kparams: output of fold_and_pad_params.
    Returns bf16 logits [B, num_classes] (upcast in the caller if f32 needed)."""
    B, D0 = x.shape
    Cp = kparams["w4"].shape[1]            # padded (lane-dense) class dim

    # One grid step per TensorCore; never more (per-step overhead >> compute here).
    if num_batch_splits is None:
        num_batch_splits = _tensorcores_per_chip()
    n_steps = max(1, min(num_batch_splits, _round_up(B, 16) // 16))
    tile = _round_up(pl.cdiv(_round_up(B, 16), n_steps), 16)   # multiple of 16 (bf16 packing)
    Bp = tile * n_steps
    if Bp != B:
        x = jnp.pad(x, ((0, Bp - B), (0, 0)))

    def resident(a):
        # Constant index_map -> stays resident across steps; single-buffer it.
        try:
            return pl.BlockSpec(a.shape, lambda i: (0, 0),
                                pipeline_mode=pl.Buffered(1))
        except (AttributeError, TypeError):
            return pl.BlockSpec(a.shape, lambda i: (0, 0))

    in_specs = [
        pl.BlockSpec((tile, D0), lambda i: (i, 0)),   # x, tiled on batch
        resident(kparams["w1"]), resident(kparams["b1"]),
        resident(kparams["w2"]), resident(kparams["b2"]),
        resident(kparams["w3"]), resident(kparams["b3"]),
        resident(kparams["w4"]), resident(kparams["b4"]),
    ]

    flops = 2 * Bp * sum(int(kparams[f"w{l}"].shape[0] * kparams[f"w{l}"].shape[1])
                         for l in (1, 2, 3, 4))
    bytes_accessed = (Bp * D0 * 4
                      + sum(int(np.prod(v.shape)) * v.dtype.itemsize
                            for v in kparams.values())
                      + Bp * Cp * 2)
    cost = pl.CostEstimate(flops=flops, transcendentals=0,
                           bytes_accessed=bytes_accessed)

    out = pl.pallas_call(
        mlp_kernel,
        out_shape=jax.ShapeDtypeStruct((Bp, Cp), jnp.bfloat16),
        grid_spec=pltpu.PrefetchScalarGridSpec(
            num_scalar_prefetch=0,
            grid=(n_steps,),
            in_specs=in_specs,
            out_specs=pl.BlockSpec((tile, Cp), lambda i: (i, 0)),
        ),
        compiler_params=pltpu.CompilerParams(
            dimension_semantics=("parallel",)),
        cost_estimate=cost,
    )(x,
      kparams["w1"], kparams["b1"],
      kparams["w2"], kparams["b2"],
      kparams["w3"], kparams["b3"],
      kparams["w4"], kparams["b4"])

    # Padding rows/cols are sliced off here; fuse this slice into the consumer
    # (or keep the padded buffer) in a real pipeline to avoid the extra HBM pass.
    return out[:B, :num_classes]


def reference_forward(x, p, compute_dtype=jnp.bfloat16):
    """Pure-JAX reference with the same BN fold and bf16-matmul / f32-accumulate math."""
    def layer(h, w, b, s, t):
        wf = (w * s).astype(compute_dtype)
        bf = (b * s + t).astype(jnp.float32)
        return jnp.maximum(
            jnp.dot(h.astype(compute_dtype), wf,
                    preferred_element_type=jnp.float32) + bf, 0.0)

    h = layer(x, p["w1"], p["b1"], p["s1"], p["t1"])
    h = layer(h, p["w2"], p["b2"], p["s2"], p["t2"])
    h = layer(h, p["w3"], p["b3"], p["s3"], p["t3"])
    return jnp.dot(h.astype(compute_dtype), p["w4"].astype(compute_dtype),
                   preferred_element_type=jnp.float32) + p["b4"]


if __name__ == "__main__":
    input_dim = 32
    num_classes = 10
    batch = 256            # 1 grid step on v5e/v6e, 2x128-row parallel steps on v7x

    key = jax.random.PRNGKey(0)
    kx, kp = jax.random.split(key)
    x = jax.random.normal(kx, (batch, input_dim), jnp.float32)

    params = init_params(kp, input_dim, num_classes)
    kparams = fold_and_pad_params(params, compute_dtype=jnp.bfloat16)

    out = simple_nn_forward(x, kparams, num_classes)
    out = jax.block_until_ready(out)

    ref = reference_forward(x, params, compute_dtype=jnp.bfloat16)
    np.testing.assert_allclose(np.asarray(out, dtype=np.float32), np.asarray(ref),
                               rtol=2e-2, atol=2e-2)
    print("KERNEL_OK")
</pallas_src>

<mosaic_0001>
module attributes {stable_mosaic.version = 11 : i64} {
  func.func @mlp_kernel(%arg0: i32, %arg1: memref<256x32xf32, #tpu.memory_space<vmem>>, %arg2: memref<32x256xbf16, #tpu.memory_space<vmem>>, %arg3: memref<1x256xf32, #tpu.memory_space<vmem>>, %arg4: memref<256x128xbf16, #tpu.memory_space<vmem>>, %arg5: memref<1x128xf32, #tpu.memory_space<vmem>>, %arg6: memref<128x128xbf16, #tpu.memory_space<vmem>>, %arg7: memref<1x128xf32, #tpu.memory_space<vmem>>, %arg8: memref<128x128xbf16, #tpu.memory_space<vmem>>, %arg9: memref<1x128xf32, #tpu.memory_space<vmem>>, %arg10: memref<256x128xbf16, #tpu.memory_space<vmem>>) attributes {dimension_semantics = [#tpu.dimension_semantics<parallel>], iteration_bounds = array<i64: 1>, scalar_prefetch = 0 : i64, scratch_operands = 0 : i64, tpu.core_type = #tpu.core_type<tc>, window_params = [{transform_indices = @transform_0, window_bounds = array<i64: 256, 32>}, {pipeline_mode = #tpu.pipeline_mode<synchronous>, transform_indices = @transform_1, window_bounds = array<i64: 32, 256>}, {pipeline_mode = #tpu.pipeline_mode<synchronous>, transform_indices = @transform_2, window_bounds = array<i64: 1, 256>}, {pipeline_mode = #tpu.pipeline_mode<synchronous>, transform_indices = @transform_3, window_bounds = array<i64: 256, 128>}, {pipeline_mode = #tpu.pipeline_mode<synchronous>, transform_indices = @transform_4, window_bounds = array<i64: 1, 128>}, {pipeline_mode = #tpu.pipeline_mode<synchronous>, transform_indices = @transform_5, window_bounds = array<i64: 128, 128>}, {pipeline_mode = #tpu.pipeline_mode<synchronous>, transform_indices = @transform_6, window_bounds = array<i64: 1, 128>}, {pipeline_mode = #tpu.pipeline_mode<synchronous>, transform_indices = @transform_7, window_bounds = array<i64: 128, 128>}, {pipeline_mode = #tpu.pipeline_mode<synchronous>, transform_indices = @transform_8, window_bounds = array<i64: 1, 128>}, {transform_indices = @transform_9, window_bounds = array<i64: 256, 128>}]} {
    %c0 = arith.constant 0 : index
    %c0_0 = arith.constant 0 : index
    %0 = vector.load %arg1[%c0, %c0_0] : memref<256x32xf32, #tpu.memory_space<vmem>>, vector<256x32xf32>
    %1 = arith.truncf %0 : vector<256x32xf32> to vector<256x32xbf16>
    %c0_1 = arith.constant 0 : index
    %c0_2 = arith.constant 0 : index
    %2 = vector.load %arg2[%c0_1, %c0_2] : memref<32x256xbf16, #tpu.memory_space<vmem>>, vector<32x256xbf16>
    %cst = arith.constant dense<0.000000e+00> : vector<256x256xf32>
    %3 = tpu.matmul %1, %2, %cst {dimension_numbers = #tpu.dot_dimension_numbers<[1], [0], [0], [1], [0, 0, 1, 1], [], []>} : vector<256x32xbf16>, vector<32x256xbf16>, vector<256x256xf32> -> vector<256x256xf32>
    %c0_3 = arith.constant 0 : index
    %c0_4 = arith.constant 0 : index
    %4 = vector.load %arg3[%c0_3, %c0_4] : memref<1x256xf32, #tpu.memory_space<vmem>>, vector<1x256xf32>
    %5 = vector.broadcast %4 : vector<1x256xf32> to vector<256x256xf32>
    %6 = arith.addf %3, %5 : vector<256x256xf32>
    %cst_5 = arith.constant 0.000000e+00 : f32
    %7 = vector.broadcast %cst_5 : f32 to vector<256x256xf32>
    %8 = arith.maximumf %6, %7 : vector<256x256xf32>
    %9 = arith.truncf %8 : vector<256x256xf32> to vector<256x256xbf16>
    %c0_6 = arith.constant 0 : index
    %c0_7 = arith.constant 0 : index
    %10 = vector.load %arg4[%c0_6, %c0_7] : memref<256x128xbf16, #tpu.memory_space<vmem>>, vector<256x128xbf16>
    %cst_8 = arith.constant dense<0.000000e+00> : vector<256x128xf32>
    %11 = tpu.matmul %9, %10, %cst_8 {dimension_numbers = #tpu.dot_dimension_numbers<[1], [0], [0], [1], [0, 0, 1, 1], [], []>} : vector<256x256xbf16>, vector<256x128xbf16>, vector<256x128xf32> -> vector<256x128xf32>
    %c0_9 = arith.constant 0 : index
    %c0_10 = arith.constant 0 : index
    %12 = vector.load %arg5[%c0_9, %c0_10] : memref<1x128xf32, #tpu.memory_space<vmem>>, vector<1x128xf32>
    %13 = vector.broadcast %12 : vector<1x128xf32> to vector<256x128xf32>
    %14 = arith.addf %11, %13 : vector<256x128xf32>
    %cst_11 = arith.constant 0.000000e+00 : f32
    %15 = vector.broadcast %cst_11 : f32 to vector<256x128xf32>
    %16 = arith.maximumf %14, %15 : vector<256x128xf32>
    %17 = arith.truncf %16 : vector<256x128xf32> to vector<256x128xbf16>
    %c0_12 = arith.constant 0 : index
    %c0_13 = arith.constant 0 : index
    %18 = vector.load %arg6[%c0_12, %c0_13] : memref<128x128xbf16, #tpu.memory_space<vmem>>, vector<128x128xbf16>
    %cst_14 = arith.constant dense<0.000000e+00> : vector<256x128xf32>
    %19 = tpu.matmul %17, %18, %cst_14 {dimension_numbers = #tpu.dot_dimension_numbers<[1], [0], [0], [1], [0, 0, 1, 1], [], []>} : vector<256x128xbf16>, vector<128x128xbf16>, vector<256x128xf32> -> vector<256x128xf32>
    %c0_15 = arith.constant 0 : index
    %c0_16 = arith.constant 0 : index
    %20 = vector.load %arg7[%c0_15, %c0_16] : memref<1x128xf32, #tpu.memory_space<vmem>>, vector<1x128xf32>
    %21 = vector.broadcast %20 : vector<1x128xf32> to vector<256x128xf32>
    %22 = arith.addf %19, %21 : vector<256x128xf32>
    %cst_17 = arith.constant 0.000000e+00 : f32
    %23 = vector.broadcast %cst_17 : f32 to vector<256x128xf32>
    %24 = arith.maximumf %22, %23 : vector<256x128xf32>
    %25 = arith.truncf %24 : vector<256x128xf32> to vector<256x128xbf16>
    %c0_18 = arith.constant 0 : index
    %c0_19 = arith.constant 0 : index
    %26 = vector.load %arg8[%c0_18, %c0_19] : memref<128x128xbf16, #tpu.memory_space<vmem>>, vector<128x128xbf16>
    %cst_20 = arith.constant dense<0.000000e+00> : vector<256x128xf32>
    %27 = tpu.matmul %25, %26, %cst_20 {dimension_numbers = #tpu.dot_dimension_numbers<[1], [0], [0], [1], [0, 0, 1, 1], [], []>} : vector<256x128xbf16>, vector<128x128xbf16>, vector<256x128xf32> -> vector<256x128xf32>
    %c0_21 = arith.constant 0 : index
    %c0_22 = arith.constant 0 : index
    %28 = vector.load %arg9[%c0_21, %c0_22] : memref<1x128xf32, #tpu.memory_space<vmem>>, vector<1x128xf32>
    %29 = vector.broadcast %28 : vector<1x128xf32> to vector<256x128xf32>
    %30 = arith.addf %27, %29 : vector<256x128xf32>
    %31 = arith.truncf %30 : vector<256x128xf32> to vector<256x128xbf16>
    %c0_23 = arith.constant 0 : index
    %c0_24 = arith.constant 0 : index
    %32 = vector.load %arg10[%c0_23, %c0_24] : memref<256x128xbf16, #tpu.memory_space<vmem>>, vector<256x128xbf16>
    tpu.vector_store %arg10[%c0_23, %c0_24], %31 {strides = array<i32>} : memref<256x128xbf16, #tpu.memory_space<vmem>>, vector<256x128xbf16>,
    return
  }
  func.func @transform_0(%arg0: i32) -> (i32, i32) {
    %c0_i32 = arith.constant 0 : i32
    %c0_i32_0 = arith.constant 0 : i32
    return %arg0, %c0_i32 : i32, i32
  }
  func.func @transform_1(%arg0: i32) -> (i32, i32) {
    %c0_i32 = arith.constant 0 : i32
    %c0_i32_0 = arith.constant 0 : i32
    %c0_i32_1 = arith.constant 0 : i32
    return %c0_i32, %c0_i32_0 : i32, i32
  }
  func.func @transform_2(%arg0: i32) -> (i32, i32) {
    %c0_i32 = arith.constant 0 : i32
    %c0_i32_0 = arith.constant 0 : i32
    %c0_i32_1 = arith.constant 0 : i32
    return %c0_i32, %c0_i32_0 : i32, i32
  }
  func.func @transform_3(%arg0: i32) -> (i32, i32) {
    %c0_i32 = arith.constant 0 : i32
    %c0_i32_0 = arith.constant 0 : i32
    %c0_i32_1 = arith.constant 0 : i32
    return %c0_i32, %c0_i32_0 : i32, i32
  }
  func.func @transform_4(%arg0: i32) -> (i32, i32) {
    %c0_i32 = arith.constant 0 : i32
    %c0_i32_0 = arith.constant 0 : i32
    %c0_i32_1 = arith.constant 0 : i32
    return %c0_i32, %c0_i32_0 : i32, i32
  }
  func.func @transform_5(%arg0: i32) -> (i32, i32) {
    %c0_i32 = arith.constant 0 : i32
    %c0_i32_0 = arith.constant 0 : i32
    %c0_i32_1 = arith.constant 0 : i32
    return %c0_i32, %c0_i32_0 : i32, i32
  }
  func.func @transform_6(%arg0: i32) -> (i32, i32) {
    %c0_i32 = arith.constant 0 : i32
    %c0_i32_0 = arith.constant 0 : i32
    %c0_i32_1 = arith.constant 0 : i32
    return %c0_i32, %c0_i32_0 : i32, i32
  }
  func.func @transform_7(%arg0: i32) -> (i32, i32) {
    %c0_i32 = arith.constant 0 : i32
    %c0_i32_0 = arith.constant 0 : i32
    %c0_i32_1 = arith.constant 0 : i32
    return %c0_i32, %c0_i32_0 : i32, i32
  }
  func.func @transform_8(%arg0: i32) -> (i32, i32) {
    %c0_i32 = arith.constant 0 : i32
    %c0_i32_0 = arith.constant 0 : i32
    %c0_i32_1 = arith.constant 0 : i32
    return %c0_i32, %c0_i32_0 : i32, i32
  }
  func.func @transform_9(%arg0: i32) -> (i32, i32) {
    %c0_i32 = arith.constant 0 : i32
    %c0_i32_0 = arith.constant 0 : i32
    return %arg0, %c0_i32 : i32, i32
  }
}

</mosaic_0001>

<bundles_post_ra>
// kernel: tpu_custom_call.1
= control target key start
LH: loop header
LB: loop body
LE: loop exit
PB: predicated region body
PF: predicated region fallthrough
CT: control target
= control target key end

     0   :  { %vm112_vm0 = vcmask 261120   ;;  %s2144_s0 = inlined_call_operand.vmem [shape: f32[256,32], index: 0, kind: input, shape index: {}]   ;;  %s2145_s1 = inlined_call_operand.vmem [shape: bf16[32,256], index: 1, kind: input, shape index: {}]   ;;  %s2146_s2 = inlined_call_operand.vmem [shape: f32[1,256], index: 2, kind: input, shape index: {}]   ;;  %s2147_s3 = inlined_call_operand.vmem [shape: bf16[256,128], index: 3, kind: input, shape index: {}]   ;;  %s2148_s4 = inlined_call_operand.vmem [shape: f32[1,128], index: 4, kind: input, shape index: {}]   ;;  %s2149_s5 = inlined_call_operand.vmem [shape: bf16[128,128], index: 5, kind: input, shape index: {}]   ;;  %s2150_s6 = inlined_call_operand.vmem [shape: f32[1,128], index: 6, kind: input, shape index: {}]   ;;  %s2151_s7 = inlined_call_operand.vmem [shape: bf16[128,128], index: 7, kind: input, shape index: {}]   ;;  %s2152_s8 = inlined_call_operand.vmem [shape: f32[1,128], index: 8, kind: input, shape index: {}]   ;;  %s2153_s9 = inlined_call_operand.hbm [shape: bf16[256,128], index: 9, kind: output, shape index: {}]  }
   0x1   :  { %v1247_v0 = vld [vmem:[%s2145_s1 + $0x10] sm:$0xf]  ;;  %v1416_v1 = vld [vmem:[%s2145_s1 + $0x14] sm:$0xf0]  ;;  %v1415_v2 = vld [vmem:[%s2145_s1 + $0x14] sm:$0xf] }
   0x2   :  { %v1248_v3 = vor.u32 %v1416_v1, %v1247_v0  ;;  %v1249_v4 = vld [vmem:[%s2145_s1 + $0x18] sm:$0xf0]  ;;  %v1239_v5 = vld [vmem:[%s2145_s1] sm:$0xf]  ;;  %v1414_v6 = vld [vmem:[%s2145_s1 + $0x4] sm:$0xf0] }
   0x3   :  { %v1252_v7 = vor.u32 %v1415_v2, %v1249_v4  ;;  %v1413_v8 = vld [vmem:[%s2145_s1 + $0x4] sm:$0xf]  ;;  %v1241_v9 = vld [vmem:[%s2145_s1 + $0x8] sm:$0xf0]  ;;  %v1240_v10 = vor.u32 %v1414_v6, %v1239_v5  ;;  %v1432_v16 = vld [vmem:[%s2147_s3 + $0x78] sm:$0xff] }
   0x4   :  { %167 = vmatpush.bf16.msra.mxu0 %v1248_v3  ;;  %v34_v11 = vld [vmem:[%s2144_s0] sm:$0xff]  ;;  %v35_v12 = vld [vmem:[%s2144_s0 + $0x8] sm:$0xff]  ;;  %1544 = vmatpush.bf16.msra.mxu2 %v1248_v3  ;;  %v1244_v13 = vor.u32 %v1413_v8, %v1241_v9  ;;  %v52_v17 = vld [vmem:[%s2144_s0 + $0x90] sm:$0xff] }
   0x5   :  { %256 = vmatpush.bf16.msra.mxu1 %v1252_v7  ;;  %1546 = vmatpush.bf16.msra.mxu3 %v1252_v7  ;;  %v50_v14 = vld [vmem:[%s2144_s0 + $0x80] sm:$0xff]  ;;  %v51_v15 = vld [vmem:[%s2144_s0 + $0x88] sm:$0xff]  ;;  %v53_v18 = vld [vmem:[%s2144_s0 + $0x98] sm:$0xff]  ;;  %v66_v20 = vpack.c.bf16 %v35_v12, %v34_v11 }
   0x6   :  { %v1424_v19 = vld [vmem:[%s2147_s3 + $0x38] sm:$0xff]  ;;  %v75_v21 = vpack.c.bf16 %v53_v18, %v52_v17  ;;  %v1689_v22 = vpack.c.bf16 %v51_v15, %v50_v14 }
   0x8   :  { %168 = vmatpush.bf16.msra.mxu0 %v1240_v10  ;;  %1545 = vmatpush.bf16.msra.mxu2 %v1240_v10 }
   0x9   :  { %257 = vmatpush.bf16.msra.mxu1 %v1244_v13  ;;  %1547 = vmatpush.bf16.msra.mxu3 %v1244_v13 }
   0xa   :  { %14 = vsyncpa [#allocation3], 0  ;;  %v1431_v23 = vld [vmem:[%s2147_s3 + $0x70] sm:$0xff]  ;;  %v1430_v25 = vld [vmem:[%s2147_s3 + $0x68] sm:$0xff]  ;;  %s1225_s22 = sshll.u32 %s2153_s9, 4  ;;  %s1589_s23 = smov 64   ;;  %s1226_s22 = int_to_ptr.hbm [resolvable:$true] %s1225_s22 }
   0xb   :  { %1253 = vmatmul.msk.bf16.vlgmr.msra.gmra.mxu0 %vm112_vm0, %v66_v20  ;;  %1262 = vmatmul.msk.bf16.vlgmr.msra.gmra.mxu2 %vm112_vm0, %v75_v21  ;;  %v1423_v24 = vld [vmem:[%s2147_s3 + $0x30] sm:$0xff]  ;;  %v37_v27 = vld [vmem:[%s2144_s0 + $0x18] sm:$0xff]  ;;  %v54_v28 = vld [vmem:[%s2144_s0 + $0xa0] sm:$0xff]  ;;  %s1590_s24 = smov 4  }
   0xc   :  { %567 = vmatpush.bf16.msrb.mxu2 %v1424_v19  ;;  %1269 = vmatmul.msk.bf16.vlgmr.msra.gmra.mxu1 %vm112_vm0, %v66_v20  ;;  %v36_v26 = vld [vmem:[%s2144_s0 + $0x10] sm:$0xff]  ;;  %v55_v29 = vld [vmem:[%s2144_s0 + $0xa8] sm:$0xff]  ;;  %v1429_v33 = vld [vmem:[%s2147_s3 + $0x60] sm:$0xff] }
   0xd   :  { %656 = vmatpush.bf16.msrb.mxu3 %v1432_v16  ;;  %v67_v30 = vpack.c.bf16 %v37_v27, %v36_v26  ;;  %v76_v31 = vpack.c.bf16 %v55_v29, %v54_v28  ;;  %v1422_v32 = vld [vmem:[%s2147_s3 + $0x28] sm:$0xff]  ;;  %v38_v34 = vld [vmem:[%s2144_s0 + $0x20] sm:$0xff]  ;;  %v56_v36 = vld [vmem:[%s2144_s0 + $0xb0] sm:$0xff] }
   0xe   :  { %1277 = vmatmul.msk.bf16.vlgmr.msra.gmra.mxu3 %vm112_vm0, %v1689_v22  ;;  %v39_v35 = vld [vmem:[%s2144_s0 + $0x28] sm:$0xff]  ;;  %v57_v37 = vld [vmem:[%s2144_s0 + $0xb8] sm:$0xff]  ;;  %v1421_v40 = vld [vmem:[%s2147_s3 + $0x20] sm:$0xff] }
   0xf   :  { %v68_v38 = vpack.c.bf16 %v39_v35, %v38_v34  ;;  %v77_v39 = vpack.c.bf16 %v57_v37, %v56_v36  ;;  %v1428_v41 = vld [vmem:[%s2147_s3 + $0x58] sm:$0xff]  ;;  %v40_v42 = vld [vmem:[%s2144_s0 + $0x30] sm:$0xff]  ;;  %v58_v44 = vld [vmem:[%s2144_s0 + $0xc0] sm:$0xff] }
  0x10   :  { %568 = vmatpush.bf16.msrb.mxu2 %v1423_v24  ;;  %v41_v43 = vld [vmem:[%s2144_s0 + $0x38] sm:$0xff]  ;;  %v59_v45 = vld [vmem:[%s2144_s0 + $0xc8] sm:$0xff]  ;;  %v1427_v49 = vld [vmem:[%s2147_s3 + $0x50] sm:$0xff] }
  0x11   :  { %657 = vmatpush.bf16.msrb.mxu3 %v1431_v23  ;;  %v69_v46 = vpack.c.bf16 %v41_v43, %v40_v42  ;;  %v78_v47 = vpack.c.bf16 %v59_v45, %v58_v44  ;;  %v1420_v48 = vld [vmem:[%s2147_s3 + $0x18] sm:$0xff]  ;;  %v42_v50 = vld [vmem:[%s2144_s0 + $0x40] sm:$0xff]  ;;  %v43_v51 = vld [vmem:[%s2144_s0 + $0x48] sm:$0xff] }
  0x12   :  { %v60_v52 = vld [vmem:[%s2144_s0 + $0xd0] sm:$0xff]  ;;  %v61_v53 = vld [vmem:[%s2144_s0 + $0xd8] sm:$0xff]  ;;  %v70_v54 = vpack.c.bf16 %v43_v51, %v42_v50  ;;  %v1426_v57 = vld [vmem:[%s2147_s3 + $0x48] sm:$0xff] }
  0x13   :  { %v79_v55 = vpack.c.bf16 %v61_v53, %v60_v52  ;;  %v1419_v56 = vld [vmem:[%s2147_s3 + $0x10] sm:$0xff]  ;;  %v45_v59 = vld [vmem:[%s2144_s0 + $0x58] sm:$0xff]  ;;  %v62_v60 = vld [vmem:[%s2144_s0 + $0xe0] sm:$0xff] }
  0x14   :  { %569 = vmatpush.bf16.msrb.mxu2 %v1422_v32  ;;  %v44_v58 = vld [vmem:[%s2144_s0 + $0x50] sm:$0xff]  ;;  %v63_v61 = vld [vmem:[%s2144_s0 + $0xe8] sm:$0xff]  ;;  %v46_v1 = vld [vmem:[%s2144_s0 + $0x60] sm:$0xff] }
  0x15   :  { %658 = vmatpush.bf16.msrb.mxu3 %v1430_v25  ;;  %v71_v62 = vpack.c.bf16 %v45_v59, %v44_v58  ;;  %v80_v63 = vpack.c.bf16 %v63_v61, %v62_v60  ;;  %v1418_v0 = vld [vmem:[%s2147_s3 + $0x8] sm:$0xff]  ;;  %v64_v3 = vld [vmem:[%s2144_s0 + $0xf0] sm:$0xff]  ;;  %v65_v4 = vld [vmem:[%s2144_s0 + $0xf8] sm:$0xff] }
  0x16   :  { %v47_v2 = vld [vmem:[%s2144_s0 + $0x68] sm:$0xff]  ;;  %v81_v6 = vpack.c.bf16 %v65_v4, %v64_v3  ;;  %v1417_v7 = vld [vmem:[%s2147_s3] sm:$0xff]  ;;  %v48_v9 = vld [vmem:[%s2144_s0 + $0x70] sm:$0xff] }
  0x17   :  { %v72_v5 = vpack.c.bf16 %v47_v2, %v46_v1  ;;  %v1425_v8 = vld [vmem:[%s2147_s3 + $0x40] sm:$0xff]  ;;  %v49_v10 = vld [vmem:[%s2144_s0 + $0x78] sm:$0xff] }
  0x18   :  { %570 = vmatpush.bf16.msrb.mxu2 %v1421_v40  ;;  %v73_v11 = vpack.c.bf16 %v49_v10, %v48_v9  ;;  %v1440_v12 = vld [vmem:[%s2149_s5 + $0x38] sm:$0xff]  ;;  %v86_v13 = vld [vmem:[%s2146_s2] sm:$0x3] }
  0x19   :  { %659 = vmatpush.bf16.msrb.mxu3 %v1429_v33  ;;  %861 = vmatpush.bf16.msrb.mxu0 %v1440_v12  ;;  %v1849_v16 = vperm.slane %v86_v13, 0  ;;  %v1853_v17 = vperm.slane %v86_v13, 1 }
  0x1b   :  { %1254 = vmatmul.msk.bf16.gmra.mxu0 %vm112_vm0, %v67_v30  ;;  %1263 = vmatmul.msk.bf16.gmra.mxu2 %vm112_vm0, %v76_v31 }
  0x1c   :  { %1270 = vmatmul.msk.bf16.gmra.mxu1 %vm112_vm0, %v67_v30  ;;  %571 = vmatpush.bf16.msrb.mxu2 %v1420_v48 }
  0x1d   :  { %660 = vmatpush.bf16.msrb.mxu3 %v1428_v41 }
  0x1e   :  { %1278 = vmatmul.msk.bf16.gmra.mxu3 %vm112_vm0, %v75_v21 }
  0x20   :  { %572 = vmatpush.bf16.msrb.mxu2 %v1419_v56 }
  0x21   :  { %661 = vmatpush.bf16.msrb.mxu3 %v1427_v49 }
  0x24   :  { %573 = vmatpush.bf16.msrb.mxu2 %v1418_v0 }
  0x25   :  { %662 = vmatpush.bf16.msrb.mxu3 %v1426_v57 }
  0x28   :  { %574 = vmatpush.bf16.msrb.mxu2 %v1417_v7 }
  0x29   :  { %663 = vmatpush.bf16.msrb.mxu3 %v1425_v8 }
  0x2b   :  { %1255 = vmatmul.msk.bf16.gmra.mxu0 %vm112_vm0, %v68_v38  ;;  %1264 = vmatmul.msk.bf16.gmra.mxu2 %vm112_vm0, %v77_v39 }
  0x2c   :  { %1271 = vmatmul.msk.bf16.gmra.mxu1 %vm112_vm0, %v68_v38  ;;  %1548 = vmatpush.bf16.msra.mxu2 %v1440_v12 }
  0x2e   :  { %1279 = vmatmul.msk.bf16.gmra.mxu3 %vm112_vm0, %v76_v31  ;;  %v1439_v31 = vld [vmem:[%s2149_s5 + $0x30] sm:$0xff] }
  0x2f   :  { %862 = vmatpush.bf16.msrb.mxu0 %v1439_v31 }
  0x30   :  { %1549 = vmatpush.bf16.msra.mxu2 %v1439_v31 }
  0x3b   :  { %1256 = vmatmul.msk.bf16.gmra.mxu0 %vm112_vm0, %v69_v46  ;;  %1265 = vmatmul.msk.bf16.gmra.mxu2 %vm112_vm0, %v78_v47 }
  0x3c   :  { %1272 = vmatmul.msk.bf16.gmra.mxu1 %vm112_vm0, %v69_v46 }
  0x3e   :  { %1280 = vmatmul.msk.bf16.gmra.mxu3 %vm112_vm0, %v77_v39 }
  0x4b   :  { %1257 = vmatmul.msk.bf16.gmra.mxu0 %vm112_vm0, %v70_v54  ;;  %1266 = vmatmul.msk.bf16.gmra.mxu2 %vm112_vm0, %v79_v55 }
  0x4c   :  { %1273 = vmatmul.msk.bf16.gmra.mxu1 %vm112_vm0, %v70_v54 }
  0x4e   :  { %1281 = vmatmul.msk.bf16.gmra.mxu3 %vm112_vm0, %v78_v47 }
  0x5b   :  { %1258 = vmatmul.msk.bf16.gmra.mxu0 %vm112_vm0, %v71_v62  ;;  %1267 = vmatmul.msk.bf16.gmra.mxu2 %vm112_vm0, %v80_v63 }
  0x5c   :  { %1274 = vmatmul.msk.bf16.gmra.mxu1 %vm112_vm0, %v71_v62 }
  0x5e   :  { %1282 = vmatmul.msk.bf16.gmra.mxu3 %vm112_vm0, %v79_v55  ;;  %v1438_v55 = vld [vmem:[%s2149_s5 + $0x28] sm:$0xff] }
  0x5f   :  { %863 = vmatpush.bf16.msrb.mxu0 %v1438_v55  ;;  %1550 = vmatpush.bf16.msra.mxu2 %v1438_v55 }
  0x6b   :  { %1259 = vmatmul.msk.bf16.gmra.mxu0 %vm112_vm0, %v72_v5  ;;  %1268 = vmatmul.msk.bf16.gmra.mxu2 %vm112_vm0, %v81_v6 }
  0x6c   :  { %1275 = vmatmul.msk.bf16.gmra.mxu1 %vm112_vm0, %v72_v5 }
  0x6e   :  { %1283 = vmatmul.msk.bf16.gmra.mxu3 %vm112_vm0, %v80_v63 }
  0x7b   :  { %1260 = vmatmul.msk.bf16.gmra.mxu0 %vm112_vm0, %v73_v11 }
  0x7c   :  { %1276 = vmatmul.msk.bf16.gmra.mxu1 %vm112_vm0, %v73_v11 }
  0x7e   :  { %1284 = vmatmul.msk.bf16.gmra.mxu3 %vm112_vm0, %v81_v6 }
  0x88   :  { %v170_v14 = vpop.f32.mrf.mxu0 }
  0x89   :  { %v259_v15 = vpop.f32.mrf.mxu1  ;;  %v171_v18 = vadd.f32 %v170_v14, %v1849_v16 }
  0x8a   :  { %v260_v20 = vadd.f32 %v259_v15, %v1853_v17 }
  0x8b   :  { %1261 = vmatmul.msk.bf16.gmra.mxu0 %vm112_vm0, %v1689_v22  ;;  %v339_v27 = vmax.f32 %v171_v18, 0.0 }
  0x8c   :  { %v340_v29 = vmax.f32 %v260_v20, 0.0 }
  0x8e   :  { %v1857_v23 = vpop.f32.mrf.mxu2 }
  0x90   :  { %v172_v21 = vpop.f32.mrf.mxu0 }
  0x91   :  { %v299_v19 = vpop.f32.mrf.mxu3  ;;  %v173_v24 = vadd.f32 %v172_v21, %v1849_v16  ;;  %v261_v25 = vpop.f32.mrf.mxu1 }
  0x92   :  { %v262_v26 = vadd.f32 %v261_v25, %v1853_v17  ;;  %v300_v22 = vadd.f32 %v299_v19, %v1853_v17  ;;  %v1437_v25 = vld [vmem:[%s2149_s5 + $0x20] sm:$0xff] }
  0x93   :  { %v341_v28 = vmax.f32 %v173_v24, 0.0  ;;  %864 = vmatpush.bf16.msrb.mxu0 %v1437_v25  ;;  %1551 = vmatpush.bf16.msra.mxu2 %v1437_v25 }
  0x94   :  { %v342_v30 = vmax.f32 %v262_v26, 0.0  ;;  %v372_v35 = vmax.f32 %v300_v22, 0.0 }
  0x95   :  { %v403_v32 = vpack.c.bf16 %v341_v28, %v339_v27 }
  0x96   :  { %v404_v33 = vpack.c.bf16 %v342_v30, %v340_v29  ;;  %v1866_v40 = vpop.f32.mrf.mxu2 }
  0x97   :  { %575 = vmatmul.bf16.vlgmr.msrb.gmra.mxu2 %v403_v32 }
  0x98   :  { %664 = vmatmul.bf16.vlgmr.msrb.gmra.mxu3 %v404_v33  ;;  %v175_v36 = vpop.f32.mrf.mxu0 }
  0x99   :  { %v301_v34 = vpop.f32.mrf.mxu3  ;;  %v264_v38 = vpop.f32.mrf.mxu1  ;;  %v176_v42 = vadd.f32 %v175_v36, %v1849_v16 }
  0x9a   :  { %v302_v37 = vadd.f32 %v301_v34, %v1853_v17  ;;  %v265_v44 = vadd.f32 %v264_v38, %v1853_v17 }
  0x9b   :  { %v343_v49 = vmax.f32 %v176_v42, 0.0 }
  0x9c   :  { %v374_v39 = vmax.f32 %v302_v37, 0.0  ;;  %v344_v51 = vmax.f32 %v265_v44, 0.0 }
  0x9e   :  { %v1868_v41 = vpack.c.bf16 %v374_v39, %v372_v35  ;;  %v1875_v54 = vpop.f32.mrf.mxu2 }
  0xa0   :  { %v177_v45 = vpop.f32.mrf.mxu0 }
  0xa1   :  { %v304_v43 = vpop.f32.mrf.mxu3  ;;  %v178_v46 = vadd.f32 %v177_v45, %v1849_v16  ;;  %v266_v47 = vpop.f32.mrf.mxu1 }
  0xa2   :  { %v267_v48 = vadd.f32 %v266_v47, %v1853_v17  ;;  %v305_v53 = vadd.f32 %v304_v43, %v1853_v17 }
  0xa3   :  { %v345_v50 = vmax.f32 %v178_v46, 0.0 }
  0xa4   :  { %v346_v52 = vmax.f32 %v267_v48, 0.0  ;;  %v376_v59 = vmax.f32 %v305_v53, 0.0 }
  0xa5   :  { %v405_v56 = vpack.c.bf16 %v345_v50, %v343_v49 }
  0xa6   :  { %v406_v57 = vpack.c.bf16 %v346_v52, %v344_v51  ;;  %v1883_v1 = vpop.f32.mrf.mxu2  ;;  %v1436_v52 = vld [vmem:[%s2149_s5 + $0x18] sm:$0xff] }
  0xa7   :  { %580 = vmatmul.bf16.gmra.mxu2 %v405_v56  ;;  %865 = vmatpush.bf16.msrb.mxu0 %v1436_v52 }
  0xa8   :  { %669 = vmatmul.bf16.gmra.mxu3 %v406_v57  ;;  %v180_v60 = vpop.f32.mrf.mxu0  ;;  %1552 = vmatpush.bf16.msra.mxu2 %v1436_v52 }
  0xa9   :  { %v306_v58 = vpop.f32.mrf.mxu3  ;;  %v269_v62 = vpop.f32.mrf.mxu1  ;;  %v181_v2 = vadd.f32 %v180_v60, %v1849_v16 }
  0xaa   :  { %v307_v61 = vadd.f32 %v306_v58, %v1853_v17  ;;  %v270_v4 = vadd.f32 %v269_v62, %v1853_v17 }
  0xab   :  { %v347_v9 = vmax.f32 %v181_v2, 0.0 }
  0xac   :  { %v378_v63 = vmax.f32 %v307_v61, 0.0  ;;  %v348_v11 = vmax.f32 %v270_v4, 0.0 }
  0xae   :  { %v1881_v0 = vpack.c.bf16 %v378_v63, %v376_v59  ;;  %v1891_v24 = vpop.f32.mrf.mxu2 }
  0xb0   :  { %v182_v5 = vpop.f32.mrf.mxu0 }
  0xb1   :  { %v309_v3 = vpop.f32.mrf.mxu3  ;;  %v183_v6 = vadd.f32 %v182_v5, %v1849_v16  ;;  %v271_v7 = vpop.f32.mrf.mxu1 }
  0xb2   :  { %v272_v8 = vadd.f32 %v271_v7, %v1853_v17  ;;  %v310_v13 = vadd.f32 %v309_v3, %v1853_v17 }
  0xb3   :  { %v349_v10 = vmax.f32 %v183_v6, 0.0 }
  0xb4   :  { %v350_v12 = vmax.f32 %v272_v8, 0.0  ;;  %v380_v19 = vmax.f32 %v310_v13, 0.0 }
  0xb5   :  { %v407_v14 = vpack.c.bf16 %v349_v10, %v347_v9 }
  0xb6   :  { %v408_v15 = vpack.c.bf16 %v350_v12, %v348_v11  ;;  %v1902_v35 = vpop.f32.mrf.mxu2 }
  0xb7   :  { %585 = vmatmul.bf16.gmra.mxu2 %v407_v14  ;;  %v1435_v14 = vld [vmem:[%s2149_s5 + $0x10] sm:$0xff] }
  0xb8   :  { %674 = vmatmul.bf16.gmra.mxu3 %v408_v15  ;;  %v185_v20 = vpop.f32.mrf.mxu0  ;;  %866 = vmatpush.bf16.msrb.mxu0 %v1435_v14 }
  0xb9   :  { %v311_v18 = vpop.f32.mrf.mxu3  ;;  %v274_v26 = vpop.f32.mrf.mxu1  ;;  %v186_v29 = vadd.f32 %v185_v20, %v1849_v16  ;;  %1553 = vmatpush.bf16.msra.mxu2 %v1435_v14 }
  0xba   :  { %v312_v21 = vadd.f32 %v311_v18, %v1853_v17  ;;  %v275_v22 = vadd.f32 %v274_v26, %v1853_v17 }
  0xbb   :  { %v351_v36 = vmax.f32 %v186_v29, 0.0 }
  0xbc   :  { %v382_v27 = vmax.f32 %v312_v21, 0.0  ;;  %v352_v38 = vmax.f32 %v275_v22, 0.0 }
  0xbe   :  { %v1896_v28 = vpack.c.bf16 %v382_v27, %v380_v19  ;;  %v1906_v51 = vpop.f32.mrf.mxu2 }
  0xc0   :  { %v187_v31 = vpop.f32.mrf.mxu0 }
  0xc1   :  { %v314_v30 = vpop.f32.mrf.mxu3  ;;  %v188_v32 = vadd.f32 %v187_v31, %v1849_v16  ;;  %v276_v33 = vpop.f32.mrf.mxu1 }
  0xc2   :  { %v277_v34 = vadd.f32 %v276_v33, %v1853_v17  ;;  %v315_v42 = vadd.f32 %v314_v30, %v1853_v17 }
  0xc3   :  { %v353_v37 = vmax.f32 %v188_v32, 0.0 }
  0xc4   :  { %v354_v39 = vmax.f32 %v277_v34, 0.0  ;;  %v384_v46 = vmax.f32 %v315_v42, 0.0 }
  0xc5   :  { %v409_v43 = vpack.c.bf16 %v353_v37, %v351_v36 }
  0xc6   :  { %v410_v44 = vpack.c.bf16 %v354_v39, %v352_v38  ;;  %v1918_v7 = vpop.f32.mrf.mxu2 }
  0xc7   :  { %590 = vmatmul.bf16.gmra.mxu2 %v409_v43 }
  0xc8   :  { %679 = vmatmul.bf16.gmra.mxu3 %v410_v44  ;;  %v190_v47 = vpop.f32.mrf.mxu0 }
  0xc9   :  { %v316_v45 = vpop.f32.mrf.mxu3  ;;  %v279_v49 = vpop.f32.mrf.mxu1  ;;  %v191_v55 = vadd.f32 %v190_v47, %v1849_v16 }
  0xca   :  { %v317_v48 = vadd.f32 %v316_v45, %v1853_v17  ;;  %v280_v57 = vadd.f32 %v279_v49, %v1853_v17 }
  0xcb   :  { %v355_v62 = vmax.f32 %v191_v55, 0.0 }
  0xcc   :  { %v386_v50 = vmax.f32 %v317_v48, 0.0  ;;  %v356_v2 = vmax.f32 %v280_v57, 0.0 }
  0xce   :  { %v1911_v53 = vpack.c.bf16 %v386_v50, %v384_v46  ;;  %v1928_v25 = vpop.f32.mrf.mxu2  ;;  %v1434_v46 = vld [vmem:[%s2149_s5 + $0x8] sm:$0xff] }
  0xcf   :  { %867 = vmatpush.bf16.msrb.mxu0 %v1434_v46  ;;  %1554 = vmatpush.bf16.msra.mxu2 %v1434_v46 }
  0xd0   :  { %v192_v58 = vpop.f32.mrf.mxu0 }
  0xd1   :  { %v319_v56 = vpop.f32.mrf.mxu3  ;;  %v193_v59 = vadd.f32 %v192_v58, %v1849_v16  ;;  %v281_v60 = vpop.f32.mrf.mxu1 }
  0xd2   :  { %v282_v61 = vadd.f32 %v281_v60, %v1853_v17  ;;  %v320_v4 = vadd.f32 %v319_v56, %v1853_v17 }
  0xd3   :  { %v357_v63 = vmax.f32 %v193_v59, 0.0 }
  0xd4   :  { %v358_v3 = vmax.f32 %v282_v61, 0.0  ;;  %v388_v9 = vmax.f32 %v320_v4, 0.0 }
  0xd5   :  { %v411_v5 = vpack.c.bf16 %v357_v63, %v355_v62 }
  0xd6   :  { %v412_v6 = vpack.c.bf16 %v358_v3, %v356_v2  ;;  %v1934_v44 = vpop.f32.mrf.mxu2 }
  0xd7   :  { %595 = vmatmul.bf16.gmra.mxu2 %v411_v5 }
  0xd8   :  { %684 = vmatmul.bf16.gmra.mxu3 %v412_v6  ;;  %v195_v10 = vpop.f32.mrf.mxu0 }
  0xd9   :  { %v321_v8 = vpop.f32.mrf.mxu3  ;;  %v284_v12 = vpop.f32.mrf.mxu1  ;;  %v196_v18 = vadd.f32 %v195_v10, %v1849_v16 }
  0xda   :  { %v322_v11 = vadd.f32 %v321_v8, %v1853_v17  ;;  %v285_v20 = vadd.f32 %v284_v12, %v1853_v17 }
  0xdb   :  { %v359_v30 = vmax.f32 %v196_v18, 0.0  ;;  %v1433_v18 = vld [vmem:[%s2149_s5] sm:$0xff] }
  0xdc   :  { %v390_v13 = vmax.f32 %v322_v11, 0.0  ;;  %v360_v31 = vmax.f32 %v285_v20, 0.0  ;;  %868 = vmatpush.bf16.msrb.mxu0 %v1433_v18  ;;  %1555 = vmatpush.bf16.msra.mxu2 %v1433_v18  ;;  %v221_v18 = vadd.f32 %v1875_v54, %v1849_v16 }
  0xde   :  { %v1924_v15 = vpack.c.bf16 %v390_v13, %v388_v9  ;;  %v1945_v62 = vpop.f32.mrf.mxu2 }
  0xe0   :  { %v197_v21 = vpop.f32.mrf.mxu0 }
  0xe1   :  { %v324_v19 = vpop.f32.mrf.mxu3  ;;  %v198_v26 = vadd.f32 %v197_v21, %v1849_v16  ;;  %v286_v27 = vpop.f32.mrf.mxu1 }
  0xe2   :  { %v287_v29 = vadd.f32 %v286_v27, %v1853_v17  ;;  %v325_v33 = vadd.f32 %v324_v19, %v1853_v17 }
  0xe3   :  { %v361_v22 = vmax.f32 %v198_v26, 0.0 }
  0xe4   :  { %v362_v32 = vmax.f32 %v287_v29, 0.0  ;;  %v392_v38 = vmax.f32 %v325_v33, 0.0 }
  0xe5   :  { %v413_v34 = vpack.c.bf16 %v361_v22, %v359_v30 }
  0xe6   :  { %v414_v36 = vpack.c.bf16 %v362_v32, %v360_v31  ;;  %v1951_v12 = vpop.f32.mrf.mxu2 }
  0xe7   :  { %600 = vmatmul.bf16.gmra.mxu2 %v413_v34 }
  0xe8   :  { %689 = vmatmul.bf16.gmra.mxu3 %v414_v36  ;;  %v200_v39 = vpop.f32.mrf.mxu0 }
  0xe9   :  { %v326_v37 = vpop.f32.mrf.mxu3  ;;  %v289_v43 = vpop.f32.mrf.mxu1  ;;  %v201_v48 = vadd.f32 %v200_v39, %v1849_v16 }
  0xea   :  { %v327_v42 = vadd.f32 %v326_v37, %v1853_v17  ;;  %v290_v50 = vadd.f32 %v289_v43, %v1853_v17 }
  0xeb   :  { %v363_v58 = vmax.f32 %v201_v48, 0.0 }
  0xec   :  { %v394_v45 = vmax.f32 %v327_v42, 0.0  ;;  %v364_v60 = vmax.f32 %v290_v50, 0.0 }
  0xee   :  { %v1939_v47 = vpack.c.bf16 %v394_v45, %v392_v38  ;;  %v1961_v37 = vpop.f32.mrf.mxu2 }
  0xf0   :  { %v202_v52 = vpop.f32.mrf.mxu0 }
  0xf1   :  { %v329_v49 = vpop.f32.mrf.mxu3  ;;  %v203_v55 = vadd.f32 %v202_v52, %v1849_v16  ;;  %v291_v56 = vpop.f32.mrf.mxu1 }
  0xf2   :  { %v292_v57 = vadd.f32 %v291_v56, %v1853_v17  ;;  %v330_v63 = vadd.f32 %v329_v49, %v1853_v17 }
  0xf3   :  { %v365_v59 = vmax.f32 %v203_v55, 0.0 }
  0xf4   :  { %v366_v61 = vmax.f32 %v292_v57, 0.0  ;;  %v396_v5 = vmax.f32 %v330_v63, 0.0  ;;  %v1448_v63 = vld [vmem:[%s2151_s7 + $0x38] sm:$0xff] }
  0xf5   :  { %v415_v2 = vpack.c.bf16 %v365_v59, %v363_v58  ;;  %v216_v59 = vadd.f32 %v1857_v23, %v1849_v16  ;;  %1066 = vmatpush.bf16.msrb.mxu1 %v1448_v63  ;;  %v233_v63 = vadd.f32 %v1918_v7, %v1849_v16 }
  0xf6   :  { %v416_v3 = vpack.c.bf16 %v366_v61, %v364_v60  ;;  %v1968_v50 = vpop.f32.mrf.mxu2  ;;  %v218_v60 = vadd.f32 %v1866_v40, %v1849_v16 }
  0xf7   :  { %605 = vmatmul.bf16.gmra.mxu2 %v415_v2 }
  0xf8   :  { %694 = vmatmul.bf16.gmra.mxu3 %v416_v3  ;;  %v205_v6 = vpop.f32.mrf.mxu0  ;;  %v377_v2 = vmax.f32 %v218_v60, 0.0 }
  0xf9   :  { %v331_v4 = vpop.f32.mrf.mxu3  ;;  %v294_v9 = vpop.f32.mrf.mxu1  ;;  %v206_v13 = vadd.f32 %v205_v6, %v1849_v16 }
  0xfa   :  { %v332_v8 = vadd.f32 %v331_v4, %v1853_v17  ;;  %v295_v19 = vadd.f32 %v294_v9, %v1853_v17 }
  0xfb   :  { %v367_v29 = vmax.f32 %v206_v13, 0.0 }
  0xfc   :  { %v398_v10 = vmax.f32 %v332_v8, 0.0  ;;  %v368_v22 = vmax.f32 %v295_v19, 0.0  ;;  %v223_v19 = vadd.f32 %v1883_v1, %v1849_v16 }
  0xfe   :  { %v1949_v11 = vpack.c.bf16 %v398_v10, %v396_v5 }
 0x100   :  { %v207_v20 = vpop.f32.mrf.mxu0 }
 0x101   :  { %v334_v14 = vpop.f32.mrf.mxu3  ;;  %v208_v21 = vadd.f32 %v207_v20, %v1849_v16  ;;  %v296_v26 = vpop.f32.mrf.mxu1 }
 0x102   :  { %v297_v27 = vadd.f32 %v296_v26, %v1853_v17  ;;  %v335_v32 = vadd.f32 %v334_v14, %v1853_v17  ;;  %v379_v26 = vmax.f32 %v221_v18, 0.0  ;;  %v238_v18 = vadd.f32 %v1934_v44, %v1849_v16 }
 0x103   :  { %v369_v30 = vmax.f32 %v208_v21, 0.0  ;;  %v1447_v21 = vld [vmem:[%s2151_s7 + $0x30] sm:$0xff] }
 0x104   :  { %v370_v31 = vmax.f32 %v297_v27, 0.0  ;;  %v400_v38 = vmax.f32 %v335_v32, 0.0  ;;  %v381_v27 = vmax.f32 %v223_v19, 0.0  ;;  %1067 = vmatpush.bf16.msrb.mxu1 %v1447_v21 }
 0x105   :  { %v417_v33 = vpack.c.bf16 %v369_v30, %v367_v29 }
 0x106   :  { %v418_v34 = vpack.c.bf16 %v370_v31, %v368_v22  ;;  %v423_v32 = vpack.c.bf16 %v381_v27, %v379_v26  ;;  %v393_v26 = vmax.f32 %v238_v18, 0.0 }
 0x107   :  { %610 = vmatmul.bf16.gmra.mxu2 %v417_v33 }
 0x108   :  { %699 = vmatmul.bf16.gmra.mxu3 %v418_v34  ;;  %v210_v39 = vpop.f32.mrf.mxu0 }
 0x109   :  { %v336_v36 = vpop.f32.mrf.mxu3  ;;  %v211_v46 = vadd.f32 %v210_v39, %v1849_v16  ;;  %v228_v39 = vadd.f32 %v1902_v35, %v1849_v16 }
 0x10a   :  { %v337_v42 = vadd.f32 %v336_v36, %v1853_v17  ;;  %v1974_v17 = vld [vmem:[%s2148_s4] ss:$0 sm:$0xff] }
 0x10b   :  { %v371_v52 = vmax.f32 %v211_v46, 0.0 }
 0x10c   :  { %v402_v43 = vmax.f32 %v337_v42, 0.0 }
 0x10e   :  { %v1964_v45 = vpack.c.bf16 %v402_v43, %v400_v38  ;;  %v226_v38 = vadd.f32 %v1891_v24, %v1849_v16  ;;  %v1446_v43 = vld [vmem:[%s2151_s7 + $0x28] sm:$0xff] }
 0x10f   :  { %1068 = vmatpush.bf16.msrb.mxu1 %v1446_v43 }
 0x110   :  { %v212_v48 = vpop.f32.mrf.mxu0  ;;  %v383_v46 = vmax.f32 %v226_v38, 0.0 }
 0x111   :  { %v213_v49 = vadd.f32 %v212_v48, %v1849_v16  ;;  %v385_v48 = vmax.f32 %v228_v39, 0.0 }
 0x113   :  { %v373_v55 = vmax.f32 %v213_v49, 0.0 }
 0x115   :  { %v419_v56 = vpack.c.bf16 %v373_v55, %v371_v52 }
 0x117   :  { %615 = vmatmul.bf16.gmra.mxu2 %v419_v56 }
 0x118   :  { %704 = vmatmul.bf16.gmra.mxu3 %v1868_v41  ;;  %v375_v41 = vmax.f32 %v216_v59, 0.0 }
 0x11a   :  { %v576_v57 = vpop.f32.mrf.mxu2  ;;  %v421_v9 = vpack.c.bf16 %v377_v2, %v375_v41  ;;  %v1445_v2 = vld [vmem:[%s2151_s7 + $0x20] sm:$0xff] }
 0x11b   :  { %v665_v58 = vpop.f32.mrf.mxu3  ;;  %v577_v61 = vadd.f32 %v1974_v17, %v576_v57  ;;  %v425_v57 = vpack.c.bf16 %v385_v48, %v383_v46  ;;  %1069 = vmatpush.bf16.msrb.mxu1 %v1445_v2 }
 0x11d   :  { %v666_v4 = vadd.f32 %v665_v58, %v577_v61  ;;  %v231_v61 = vadd.f32 %v1906_v51, %v1849_v16 }
 0x11f   :  { %v745_v23 = vmax.f32 %v666_v4, 0.0  ;;  %v389_v4 = vmax.f32 %v233_v63, 0.0 }
 0x122   :  { %v578_v3 = vpop.f32.mrf.mxu2 }
 0x123   :  { %v579_v5 = vadd.f32 %v1974_v17, %v578_v3  ;;  %v667_v6 = vpop.f32.mrf.mxu3  ;;  %v387_v3 = vmax.f32 %v231_v61, 0.0 }
 0x125   :  { %v668_v8 = vadd.f32 %v667_v6, %v579_v5 }
 0x127   :  { %v746_v10 = vmax.f32 %v668_v8, 0.0  ;;  %620 = vmatmul.bf16.gmra.mxu2 %v421_v9 }
 0x128   :  { %709 = vmatmul.bf16.gmra.mxu3 %v1881_v0 }
 0x129   :  { %v777_v40 = vpack.c.bf16 %v746_v10, %v745_v23  ;;  %v427_v23 = vpack.c.bf16 %v389_v4, %v387_v3 }
 0x12a   :  { %v581_v13 = vpop.f32.mrf.mxu2 }
 0x12b   :  { %v670_v14 = vpop.f32.mrf.mxu3  ;;  %869 = vmatmul.bf16.vlgmr.msrb.gmra.mxu0 %v777_v40  ;;  %v582_v20 = vadd.f32 %v1974_v17, %v581_v13 }
 0x12d   :  { %v671_v29 = vadd.f32 %v670_v14, %v582_v20  ;;  %v236_v14 = vadd.f32 %v1928_v25, %v1849_v16  ;;  %v1444_v20 = vld [vmem:[%s2151_s7 + $0x18] sm:$0xff] }
 0x12e   :  { %1070 = vmatpush.bf16.msrb.mxu1 %v1444_v20 }
 0x12f   :  { %v747_v54 = vmax.f32 %v671_v29, 0.0  ;;  %v391_v21 = vmax.f32 %v236_v14, 0.0 }
 0x132   :  { %v583_v0 = vpop.f32.mrf.mxu2 }
 0x133   :  { %v584_v30 = vadd.f32 %v1974_v17, %v583_v0  ;;  %v672_v22 = vpop.f32.mrf.mxu3 }
 0x135   :  { %v673_v31 = vadd.f32 %v672_v22, %v584_v30  ;;  %v429_v22 = vpack.c.bf16 %v393_v26, %v391_v21 }
 0x137   :  { %v748_v33 = vmax.f32 %v673_v31, 0.0  ;;  %625 = vmatmul.bf16.gmra.mxu2 %v423_v32 }
 0x138   :  { %714 = vmatmul.bf16.gmra.mxu3 %v1896_v28 }
 0x139   :  { %v778_v1 = vpack.c.bf16 %v748_v33, %v747_v54  ;;  %v241_v33 = vadd.f32 %v1945_v62, %v1849_v16 }
 0x13a   :  { %v586_v34 = vpop.f32.mrf.mxu2 }
 0x13b   :  { %v675_v36 = vpop.f32.mrf.mxu3  ;;  %874 = vmatmul.bf16.gmra.mxu0 %v778_v1  ;;  %v587_v42 = vadd.f32 %v1974_v17, %v586_v34  ;;  %v243_v1 = vadd.f32 %v1951_v12, %v1849_v16  ;;  %v395_v38 = vmax.f32 %v241_v33, 0.0 }
 0x13d   :  { %v676_v49 = vadd.f32 %v675_v36, %v587_v42  ;;  %v1443_v36 = vld [vmem:[%s2151_s7 + $0x10] sm:$0xff]  ;;  %v397_v39 = vmax.f32 %v243_v1, 0.0 }
 0x13e   :  { %1071 = vmatpush.bf16.msrb.mxu1 %v1443_v36 }
 0x13f   :  { %v749_v24 = vmax.f32 %v676_v49, 0.0 }
 0x142   :  { %v588_v28 = vpop.f32.mrf.mxu2 }
 0x143   :  { %v589_v52 = vadd.f32 %v1974_v17, %v588_v28  ;;  %v677_v55 = vpop.f32.mrf.mxu3  ;;  %v431_v28 = vpack.c.bf16 %v397_v39, %v395_v38 }
 0x145   :  { %v678_v56 = vadd.f32 %v677_v55, %v589_v52 }
 0x147   :  { %v750_v58 = vmax.f32 %v678_v56, 0.0  ;;  %630 = vmatmul.bf16.gmra.mxu2 %v425_v57  ;;  %v246_v56 = vadd.f32 %v1961_v37, %v1849_v16  ;;  %v248_v57 = vadd.f32 %v1968_v50, %v1849_v16 }
 0x148   :  { %719 = vmatmul.bf16.gmra.mxu3 %v1911_v53 }
 0x149   :  { %v779_v35 = vpack.c.bf16 %v750_v58, %v749_v24  ;;  %v1442_v58 = vld [vmem:[%s2151_s7 + $0x8] sm:$0xff] }
 0x14a   :  { %v591_v59 = vpop.f32.mrf.mxu2  ;;  %1072 = vmatpush.bf16.msrb.mxu1 %v1442_v58 }
 0x14b   :  { %v680_v60 = vpop.f32.mrf.mxu3  ;;  %879 = vmatmul.bf16.gmra.mxu0 %v779_v35  ;;  %v592_v41 = vadd.f32 %v1974_v17, %v591_v59  ;;  %v399_v35 = vmax.f32 %v246_v56, 0.0  ;;  %v401_v59 = vmax.f32 %v248_v57, 0.0 }
 0x14d   :  { %v681_v5 = vadd.f32 %v680_v60, %v592_v41  ;;  %v433_v2 = vpack.c.bf16 %v401_v59, %v399_v35 }
 0x14f   :  { %v751_v51 = vmax.f32 %v681_v5, 0.0  ;;  %v1441_v5 = vld [vmem:[%s2151_s7] sm:$0xff] }
 0x150   :  { %1073 = vmatpush.bf16.msrb.mxu1 %v1441_v5 }
 0x152   :  { %v593_v53 = vpop.f32.mrf.mxu2 }
 0x153   :  { %v594_v6 = vadd.f32 %v1974_v17, %v593_v53  ;;  %v682_v8 = vpop.f32.mrf.mxu3 }
 0x155   :  { %v683_v9 = vadd.f32 %v682_v8, %v594_v6 }
 0x157   :  { %v752_v10 = vmax.f32 %v683_v9, 0.0  ;;  %635 = vmatmul.bf16.gmra.mxu2 %v427_v23 }
 0x158   :  { %724 = vmatmul.bf16.gmra.mxu3 %v1924_v15 }
 0x159   :  { %v780_v7 = vpack.c.bf16 %v752_v10, %v751_v51 }
 0x15a   :  { %v596_v40 = vpop.f32.mrf.mxu2 }
 0x15b   :  { %v685_v13 = vpop.f32.mrf.mxu3  ;;  %884 = vmatmul.bf16.gmra.mxu0 %v780_v7  ;;  %v597_v19 = vadd.f32 %v1974_v17, %v596_v40 }
 0x15d   :  { %v686_v27 = vadd.f32 %v685_v13, %v597_v19 }
 0x15f   :  { %v753_v25 = vmax.f32 %v686_v27, 0.0 }
 0x162   :  { %v598_v15 = vpop.f32.mrf.mxu2 }
 0x163   :  { %v599_v0 = vadd.f32 %v1974_v17, %v598_v15  ;;  %v687_v29 = vpop.f32.mrf.mxu3 }
 0x165   :  { %v688_v30 = vadd.f32 %v687_v29, %v599_v0 }
 0x167   :  { %v754_v31 = vmax.f32 %v688_v30, 0.0  ;;  %640 = vmatmul.bf16.gmra.mxu2 %v429_v22  ;;  %v2056_v22 = vld [vmem:[%s2150_s6] ss:$0 sm:$0xff] }
 0x168   :  { %729 = vmatmul.bf16.gmra.mxu3 %v1939_v47 }
 0x169   :  { %v781_v44 = vpack.c.bf16 %v754_v31, %v753_v25 }
 0x16a   :  { %v601_v32 = vpop.f32.mrf.mxu2 }
 0x16b   :  { %v690_v54 = vpop.f32.mrf.mxu3  ;;  %889 = vmatmul.bf16.gmra.mxu0 %v781_v44  ;;  %v602_v34 = vadd.f32 %v1974_v17, %v601_v32 }
 0x16d   :  { %v691_v42 = vadd.f32 %v690_v54, %v602_v34 }
 0x16f   :  { %v755_v62 = vmax.f32 %v691_v42, 0.0 }
 0x172   :  { %v603_v47 = vpop.f32.mrf.mxu2 }
 0x173   :  { %v604_v43 = vadd.f32 %v1974_v17, %v603_v47  ;;  %v692_v46 = vpop.f32.mrf.mxu3 }
 0x175   :  { %v693_v48 = vadd.f32 %v692_v46, %v604_v43 }
 0x177   :  { %v756_v49 = vmax.f32 %v693_v48, 0.0  ;;  %645 = vmatmul.bf16.gmra.mxu2 %v431_v28 }
 0x178   :  { %734 = vmatmul.bf16.gmra.mxu3 %v1949_v11 }
 0x179   :  { %v782_v12 = vpack.c.bf16 %v756_v49, %v755_v62 }
 0x17a   :  { %v606_v52 = vpop.f32.mrf.mxu2 }
 0x17b   :  { %v695_v55 = vpop.f32.mrf.mxu3  ;;  %894 = vmatmul.bf16.gmra.mxu0 %v782_v12  ;;  %v607_v24 = vadd.f32 %v1974_v17, %v606_v52 }
 0x17d   :  { %v696_v60 = vadd.f32 %v695_v55, %v607_v24 }
 0x17f   :  { %v757_v37 = vmax.f32 %v696_v60, 0.0 }
 0x182   :  { %v608_v11 = vpop.f32.mrf.mxu2 }
 0x183   :  { %v609_v61 = vadd.f32 %v1974_v17, %v608_v11  ;;  %v697_v63 = vpop.f32.mrf.mxu3 }
 0x185   :  { %v698_v41 = vadd.f32 %v697_v63, %v609_v61 }
 0x187   :  { %v758_v3 = vmax.f32 %v698_v41, 0.0  ;;  %650 = vmatmul.bf16.gmra.mxu2 %v433_v2 }
 0x188   :  { %739 = vmatmul.bf16.gmra.mxu3 %v1964_v45 }
 0x189   :  { %v783_v16 = vpack.c.bf16 %v758_v3, %v757_v37 }
 0x18a   :  { %v611_v50 = vpop.f32.mrf.mxu2 }
 0x18b   :  { %v700_v4 = vpop.f32.mrf.mxu3  ;;  %899 = vmatmul.bf16.gmra.mxu0 %v783_v16  ;;  %v612_v53 = vadd.f32 %v1974_v17, %v611_v50 }
 0x18d   :  { %v701_v8 = vadd.f32 %v700_v4, %v612_v53 }
 0x18f   :  { %v759_v10 = vmax.f32 %v701_v8, 0.0 }
 0x192   :  { %v613_v6 = vpop.f32.mrf.mxu2 }
 0x193   :  { %v614_v9 = vadd.f32 %v1974_v17, %v613_v6  ;;  %v702_v23 = vpop.f32.mrf.mxu3 }
 0x195   :  { %v703_v51 = vadd.f32 %v702_v23, %v614_v9 }
 0x197   :  { %v760_v7 = vmax.f32 %v703_v51, 0.0 }
 0x199   :  { %v784_v45 = vpack.c.bf16 %v760_v7, %v759_v10 }
 0x19a   :  { %v616_v40 = vpop.f32.mrf.mxu2 }
 0x19b   :  { %v705_v13 = vpop.f32.mrf.mxu3  ;;  %904 = vmatmul.bf16.gmra.mxu0 %v784_v45  ;;  %v617_v14 = vadd.f32 %v1974_v17, %v616_v40 }
 0x19d   :  { %v706_v19 = vadd.f32 %v705_v13, %v617_v14 }
 0x19f   :  { %v761_v15 = vmax.f32 %v706_v19, 0.0 }
 0x1a2   :  { %v618_v18 = vpop.f32.mrf.mxu2 }
 0x1a3   :  { %v619_v20 = vadd.f32 %v1974_v17, %v618_v18  ;;  %v707_v21 = vpop.f32.mrf.mxu3 }
 0x1a5   :  { %v708_v26 = vadd.f32 %v707_v21, %v619_v20 }
 0x1a7   :  { %v762_v27 = vmax.f32 %v708_v26, 0.0 }
 0x1a8   :  { %v870_v0 = vpop.f32.mrf.mxu0 }
 0x1a9   :  { %v785_v29 = vpack.c.bf16 %v762_v27, %v761_v15  ;;  %v871_v31 = vadd.f32 %v2056_v22, %v870_v0 }
 0x1aa   :  { %v621_v30 = vpop.f32.mrf.mxu2 }
 0x1ab   :  { %v710_v25 = vpop.f32.mrf.mxu3  ;;  %909 = vmatmul.bf16.gmra.mxu0 %v785_v29  ;;  %v622_v44 = vadd.f32 %v1974_v17, %v621_v30  ;;  %v950_v1 = vmax.f32 %v871_v31, 0.0 }
 0x1ad   :  { %v711_v34 = vadd.f32 %v710_v25, %v622_v44 }
 0x1af   :  { %v763_v43 = vmax.f32 %v711_v34, 0.0 }
 0x1b0   :  { %v872_v32 = vpop.f32.mrf.mxu0 }
 0x1b1   :  { %v873_v54 = vadd.f32 %v2056_v22, %v872_v32 }
 0x1b2   :  { %v623_v33 = vpop.f32.mrf.mxu2 }
 0x1b3   :  { %v951_v36 = vmax.f32 %v873_v54, 0.0  ;;  %v624_v38 = vadd.f32 %v1974_v17, %v623_v33  ;;  %v712_v39 = vpop.f32.mrf.mxu3 }
 0x1b5   :  { %v713_v47 = vadd.f32 %v712_v39, %v624_v38  ;;  %v982_v42 = vpack.c.bf16 %v951_v36, %v950_v1 }
 0x1b7   :  { %v764_v46 = vmax.f32 %v713_v47, 0.0  ;;  %1074 = vmatmul.bf16.vlgmr.msrb.gmra.mxu1 %v982_v42 }
 0x1b8   :  { %v875_v48 = vpop.f32.mrf.mxu0 }
 0x1b9   :  { %v786_v28 = vpack.c.bf16 %v764_v46, %v763_v43  ;;  %v876_v12 = vadd.f32 %v2056_v22, %v875_v48 }
 0x1ba   :  { %v626_v62 = vpop.f32.mrf.mxu2 }
 0x1bb   :  { %v715_v49 = vpop.f32.mrf.mxu3  ;;  %914 = vmatmul.bf16.gmra.mxu0 %v786_v28  ;;  %v627_v52 = vadd.f32 %v1974_v17, %v626_v62  ;;  %v952_v24 = vmax.f32 %v876_v12, 0.0 }
 0x1bd   :  { %v716_v58 = vadd.f32 %v715_v49, %v627_v52 }
 0x1bf   :  { %v765_v63 = vmax.f32 %v716_v58, 0.0 }
 0x1c0   :  { %v877_v55 = vpop.f32.mrf.mxu0 }
 0x1c1   :  { %v878_v56 = vadd.f32 %v2056_v22, %v877_v55 }
 0x1c2   :  { %v628_v57 = vpop.f32.mrf.mxu2 }
 0x1c3   :  { %v953_v35 = vmax.f32 %v878_v56, 0.0  ;;  %v629_v59 = vadd.f32 %v1974_v17, %v628_v57  ;;  %v717_v11 = vpop.f32.mrf.mxu3 }
 0x1c5   :  { %v718_v60 = vadd.f32 %v717_v11, %v629_v59  ;;  %v983_v61 = vpack.c.bf16 %v953_v35, %v952_v24 }
 0x1c7   :  { %v766_v41 = vmax.f32 %v718_v60, 0.0  ;;  %1079 = vmatmul.bf16.gmra.mxu1 %v983_v61 }
 0x1c8   :  { %v880_v2 = vpop.f32.mrf.mxu0 }
 0x1c9   :  { %v787_v37 = vpack.c.bf16 %v766_v41, %v765_v63  ;;  %v881_v50 = vadd.f32 %v2056_v22, %v880_v2 }
 0x1ca   :  { %v631_v3 = vpop.f32.mrf.mxu2 }
 0x1cb   :  { %v720_v16 = vpop.f32.mrf.mxu3  ;;  %919 = vmatmul.bf16.gmra.mxu0 %v787_v37  ;;  %v632_v4 = vadd.f32 %v1974_v17, %v631_v3  ;;  %v954_v8 = vmax.f32 %v881_v50, 0.0 }
 0x1cd   :  { %v721_v9 = vadd.f32 %v720_v16, %v632_v4 }
 0x1cf   :  { %v767_v40 = vmax.f32 %v721_v9, 0.0 }
 0x1d0   :  { %v882_v53 = vpop.f32.mrf.mxu0 }
 0x1d1   :  { %v883_v5 = vadd.f32 %v2056_v22, %v882_v53 }
 0x1d2   :  { %v633_v6 = vpop.f32.mrf.mxu2 }
 0x1d3   :  { %v955_v23 = vmax.f32 %v883_v5, 0.0  ;;  %v634_v51 = vadd.f32 %v1974_v17, %v633_v6  ;;  %v722_v10 = vpop.f32.mrf.mxu3 }
 0x1d5   :  { %v723_v7 = vadd.f32 %v722_v10, %v634_v51  ;;  %v984_v45 = vpack.c.bf16 %v955_v23, %v954_v8 }
 0x1d7   :  { %v768_v13 = vmax.f32 %v723_v7, 0.0  ;;  %1084 = vmatmul.bf16.gmra.mxu1 %v984_v45 }
 0x1d8   :  { %v885_v14 = vpop.f32.mrf.mxu0 }
 0x1d9   :  { %v788_v18 = vpack.c.bf16 %v768_v13, %v767_v40  ;;  %v886_v21 = vadd.f32 %v2056_v22, %v885_v14 }
 0x1da   :  { %v636_v19 = vpop.f32.mrf.mxu2 }
 0x1db   :  { %v725_v20 = vpop.f32.mrf.mxu3  ;;  %924 = vmatmul.bf16.gmra.mxu0 %v788_v18  ;;  %v637_v26 = vadd.f32 %v1974_v17, %v636_v19  ;;  %v956_v29 = vmax.f32 %v886_v21, 0.0 }
 0x1dd   :  { %v726_v30 = vadd.f32 %v725_v20, %v637_v26 }
 0x1df   :  { %v769_v33 = vmax.f32 %v726_v30, 0.0 }
 0x1e0   :  { %v887_v15 = vpop.f32.mrf.mxu0 }
 0x1e1   :  { %v888_v27 = vadd.f32 %v2056_v22, %v887_v15 }
 0x1e2   :  { %v638_v0 = vpop.f32.mrf.mxu2 }
 0x1e3   :  { %v957_v25 = vmax.f32 %v888_v27, 0.0  ;;  %v639_v31 = vadd.f32 %v1974_v17, %v638_v0  ;;  %v727_v44 = vpop.f32.mrf.mxu3 }
 0x1e5   :  { %v728_v32 = vadd.f32 %v727_v44, %v639_v31  ;;  %v985_v54 = vpack.c.bf16 %v957_v25, %v956_v29 }
 0x1e7   :  { %v770_v1 = vmax.f32 %v728_v32, 0.0  ;;  %1089 = vmatmul.bf16.gmra.mxu1 %v985_v54 }
 0x1e8   :  { %v890_v34 = vpop.f32.mrf.mxu0 }
 0x1e9   :  { %v789_v36 = vpack.c.bf16 %v770_v1, %v769_v33  ;;  %v891_v47 = vadd.f32 %v2056_v22, %v890_v34 }
 0x1ea   :  { %v641_v38 = vpop.f32.mrf.mxu2 }
 0x1eb   :  { %v730_v39 = vpop.f32.mrf.mxu3  ;;  %929 = vmatmul.bf16.gmra.mxu0 %v789_v36  ;;  %v642_v42 = vadd.f32 %v1974_v17, %v641_v38  ;;  %v958_v28 = vmax.f32 %v891_v47, 0.0 }
 0x1ed   :  { %v731_v62 = vadd.f32 %v730_v39, %v642_v42 }
 0x1ef   :  { %v771_v57 = vmax.f32 %v731_v62, 0.0 }
 0x1f0   :  { %v892_v43 = vpop.f32.mrf.mxu0 }
 0x1f1   :  { %v893_v46 = vadd.f32 %v2056_v22, %v892_v43 }
 0x1f2   :  { %v643_v48 = vpop.f32.mrf.mxu2 }
 0x1f3   :  { %v959_v49 = vmax.f32 %v893_v46, 0.0  ;;  %v644_v12 = vadd.f32 %v1974_v17, %v643_v48  ;;  %v732_v52 = vpop.f32.mrf.mxu3  ;;  %v2093_v48 = vld [vmem:[%s2152_s8] ss:$0 sm:$0xff]  ;;  %s1588_s8 = smov [#allocation2]  }
 0x1f4   :  { %s1223_s19 = sshll.u32 %s1588_s8, 4  ;;  %s1224_s19 = int_to_ptr.vmem [resolvable:$true] %s1223_s19 }
 0x1f5   :  { %v986_v55 = vpack.c.bf16 %v959_v49, %v958_v28  ;;  %v733_v56 = vadd.f32 %v732_v52, %v644_v12 }
 0x1f7   :  { %v772_v24 = vmax.f32 %v733_v56, 0.0  ;;  %1094 = vmatmul.bf16.gmra.mxu1 %v986_v55 }
 0x1f8   :  { %v895_v58 = vpop.f32.mrf.mxu0 }
 0x1f9   :  { %v790_v35 = vpack.c.bf16 %v772_v24, %v771_v57  ;;  %v896_v60 = vadd.f32 %v2056_v22, %v895_v58 }
 0x1fa   :  { %v646_v59 = vpop.f32.mrf.mxu2 }
 0x1fb   :  { %v735_v11 = vpop.f32.mrf.mxu3  ;;  %934 = vmatmul.bf16.gmra.mxu0 %v790_v35  ;;  %v647_v61 = vadd.f32 %v1974_v17, %v646_v59  ;;  %v960_v37 = vmax.f32 %v896_v60, 0.0 }
 0x1fd   :  { %v736_v3 = vadd.f32 %v735_v11, %v647_v61 }
 0x1ff   :  { %v773_v6 = vmax.f32 %v736_v3, 0.0 }
 0x200   :  { %v897_v63 = vpop.f32.mrf.mxu0 }
 0x201   :  { %v898_v41 = vadd.f32 %v2056_v22, %v897_v63 }
 0x202   :  { %v648_v2 = vpop.f32.mrf.mxu2 }
 0x203   :  { %v961_v16 = vmax.f32 %v898_v41, 0.0  ;;  %v649_v50 = vadd.f32 %v1974_v17, %v648_v2  ;;  %v737_v4 = vpop.f32.mrf.mxu3 }
 0x205   :  { %v987_v53 = vpack.c.bf16 %v961_v16, %v960_v37  ;;  %v738_v5 = vadd.f32 %v737_v4, %v649_v50 }
 0x207   :  { %v774_v8 = vmax.f32 %v738_v5, 0.0  ;;  %1099 = vmatmul.bf16.gmra.mxu1 %v987_v53 }
 0x208   :  { %v900_v9 = vpop.f32.mrf.mxu0 }
 0x209   :  { %v791_v23 = vpack.c.bf16 %v774_v8, %v773_v6  ;;  %v901_v7 = vadd.f32 %v2056_v22, %v900_v9 }
 0x20a   :  { %v651_v51 = vpop.f32.mrf.mxu2 }
 0x20b   :  { %v740_v10 = vpop.f32.mrf.mxu3  ;;  %939 = vmatmul.bf16.gmra.mxu0 %v791_v23  ;;  %v652_v45 = vadd.f32 %v1974_v17, %v651_v51  ;;  %v962_v18 = vmax.f32 %v901_v7, 0.0 }
 0x20d   :  { %v741_v19 = vadd.f32 %v740_v10, %v652_v45 }
 0x20f   :  { %v775_v0 = vmax.f32 %v741_v19, 0.0 }
 0x210   :  { %v902_v40 = vpop.f32.mrf.mxu0 }
 0x211   :  { %v903_v13 = vadd.f32 %v2056_v22, %v902_v40 }
 0x212   :  { %v653_v14 = vpop.f32.mrf.mxu2 }
 0x213   :  { %v963_v20 = vmax.f32 %v903_v13, 0.0  ;;  %v654_v21 = vadd.f32 %v1974_v17, %v653_v14  ;;  %v742_v26 = vpop.f32.mrf.mxu3 }
 0x215   :  { %v988_v15 = vpack.c.bf16 %v963_v20, %v962_v18  ;;  %v743_v27 = vadd.f32 %v742_v26, %v654_v21 }
 0x217   :  { %v776_v29 = vmax.f32 %v743_v27, 0.0  ;;  %1104 = vmatmul.bf16.gmra.mxu1 %v988_v15 }
 0x218   :  { %v905_v30 = vpop.f32.mrf.mxu0 }
 0x219   :  { %v792_v25 = vpack.c.bf16 %v776_v29, %v775_v0  ;;  %v906_v31 = vadd.f32 %v2056_v22, %v905_v30 }
 0x21b   :  { %944 = vmatmul.bf16.vlgmr.msra.gmra.mxu2 %v792_v25  ;;  %v964_v54 = vmax.f32 %v906_v31, 0.0 }
 0x220   :  { %v907_v44 = vpop.f32.mrf.mxu0 }
 0x221   :  { %v908_v32 = vadd.f32 %v2056_v22, %v907_v44 }
 0x223   :  { %v965_v33 = vmax.f32 %v908_v32, 0.0 }
 0x225   :  { %v989_v1 = vpack.c.bf16 %v965_v33, %v964_v54 }
 0x227   :  { %1109 = vmatmul.bf16.gmra.mxu1 %v989_v1 }
 0x228   :  { %v910_v34 = vpop.f32.mrf.mxu0 }
 0x229   :  { %v911_v17 = vadd.f32 %v2056_v22, %v910_v34 }
 0x22b   :  { %v966_v39 = vmax.f32 %v911_v17, 0.0 }
 0x230   :  { %v912_v36 = vpop.f32.mrf.mxu0 }
 0x231   :  { %v913_v38 = vadd.f32 %v2056_v22, %v912_v36 }
 0x233   :  { %v967_v47 = vmax.f32 %v913_v38, 0.0 }
 0x234   :  { %v1075_v42 = vpop.f32.mrf.mxu1 }
 0x235   :  { %v990_v43 = vpack.c.bf16 %v967_v47, %v966_v39  ;;  %v1076_v62 = vadd.f32 %v2093_v48, %v1075_v42 }
 0x237   :  { %1114 = vmatmul.bf16.gmra.mxu1 %v990_v43 }
 0x238   :  { %v915_v46 = vpop.f32.mrf.mxu0 }
 0x239   :  { %v916_v12 = vadd.f32 %v2056_v22, %v915_v46 }
 0x23b   :  { %v968_v57 = vmax.f32 %v916_v12, 0.0 }
 0x23c   :  { %v1077_v28 = vpop.f32.mrf.mxu1 }
 0x23d   :  { %v1078_v49 = vadd.f32 %v2093_v48, %v1077_v28 }
 0x23f   :  { %v1452_v52 = vpack.c.bf16 %v1078_v49, %v1076_v62 }
 0x240   :  { %v917_v55 = vpop.f32.mrf.mxu0 }
 0x241   :  { %1453 = vst [vmem:[#allocation2] sm:$0xff] %v1452_v52   ;;  %v918_v56 = vadd.f32 %v2056_v22, %v917_v55 }
 0x243   :  { %v969_v24 = vmax.f32 %v918_v56, 0.0 }
 0x244   :  { %v1080_v58 = vpop.f32.mrf.mxu1 }
 0x245   :  { %v991_v35 = vpack.c.bf16 %v969_v24, %v968_v57  ;;  %v1081_v60 = vadd.f32 %v2093_v48, %v1080_v58 }
 0x247   :  { %1119 = vmatmul.bf16.gmra.mxu1 %v991_v35 }
 0x248   :  { %v920_v59 = vpop.f32.mrf.mxu0 }
 0x249   :  { %v921_v63 = vadd.f32 %v2056_v22, %v920_v59 }
 0x24b   :  { %v970_v3 = vmax.f32 %v921_v63, 0.0 }
 0x24c   :  { %v1082_v11 = vpop.f32.mrf.mxu1 }
 0x24d   :  { %v1083_v61 = vadd.f32 %v2093_v48, %v1082_v11 }
 0x24f   :  { %v1457_v41 = vpack.c.bf16 %v1083_v61, %v1081_v60 }
 0x250   :  { %v922_v2 = vpop.f32.mrf.mxu0 }
 0x251   :  { %1529 = vst [vmem:[#allocation2 + $0x8] sm:$0xff] %v1457_v41   ;;  %v923_v37 = vadd.f32 %v2056_v22, %v922_v2 }
 0x253   :  { %v971_v16 = vmax.f32 %v923_v37, 0.0 }
 0x254   :  { %v1085_v50 = vpop.f32.mrf.mxu1 }
 0x255   :  { %v992_v4 = vpack.c.bf16 %v971_v16, %v970_v3  ;;  %v1086_v6 = vadd.f32 %v2093_v48, %v1085_v50 }
 0x257   :  { %1124 = vmatmul.bf16.gmra.mxu1 %v992_v4 }
 0x258   :  { %v925_v53 = vpop.f32.mrf.mxu0 }
 0x259   :  { %v926_v9 = vadd.f32 %v2056_v22, %v925_v53 }
 0x25b   :  { %v972_v7 = vmax.f32 %v926_v9, 0.0 }
 0x25c   :  { %v1087_v5 = vpop.f32.mrf.mxu1 }
 0x25d   :  { %v1088_v8 = vadd.f32 %v2093_v48, %v1087_v5 }
 0x25f   :  { %v1462_v23 = vpack.c.bf16 %v1088_v8, %v1086_v6 }
 0x260   :  { %v927_v51 = vpop.f32.mrf.mxu0 }
 0x261   :  { %1530 = vst [vmem:[#allocation2 + $0x10] sm:$0xff] %v1462_v23   ;;  %v928_v10 = vadd.f32 %v2056_v22, %v927_v51 }
 0x263   :  { %v973_v45 = vmax.f32 %v928_v10, 0.0 }
 0x264   :  { %v1090_v40 = vpop.f32.mrf.mxu1 }
 0x265   :  { %v993_v13 = vpack.c.bf16 %v973_v45, %v972_v7  ;;  %v1091_v19 = vadd.f32 %v2093_v48, %v1090_v40 }
 0x267   :  { %1129 = vmatmul.bf16.gmra.mxu1 %v993_v13 }
 0x268   :  { %v930_v14 = vpop.f32.mrf.mxu0 }
 0x269   :  { %v931_v21 = vadd.f32 %v2056_v22, %v930_v14 }
 0x26b   :  { %v974_v0 = vmax.f32 %v931_v21, 0.0 }
 0x26c   :  { %v1092_v18 = vpop.f32.mrf.mxu1 }
 0x26d   :  { %v1093_v20 = vadd.f32 %v2093_v48, %v1092_v18 }
 0x26f   :  { %v1467_v26 = vpack.c.bf16 %v1093_v20, %v1091_v19 }
 0x270   :  { %v932_v15 = vpop.f32.mrf.mxu0 }
 0x271   :  { %1531 = vst [vmem:[#allocation2 + $0x18] sm:$0xff] %v1467_v26   ;;  %v933_v27 = vadd.f32 %v2056_v22, %v932_v15 }
 0x273   :  { %v975_v29 = vmax.f32 %v933_v27, 0.0 }
 0x274   :  { %v1095_v30 = vpop.f32.mrf.mxu1 }
 0x275   :  { %v994_v25 = vpack.c.bf16 %v975_v29, %v974_v0  ;;  %v1096_v32 = vadd.f32 %v2093_v48, %v1095_v30 }
 0x277   :  { %1134 = vmatmul.bf16.gmra.mxu1 %v994_v25 }
 0x278   :  { %v935_v31 = vpop.f32.mrf.mxu0 }
 0x279   :  { %v936_v33 = vadd.f32 %v2056_v22, %v935_v31 }
 0x27b   :  { %v976_v36 = vmax.f32 %v936_v33, 0.0 }
 0x27c   :  { %v1097_v44 = vpop.f32.mrf.mxu1 }
 0x27d   :  { %v1098_v54 = vadd.f32 %v2093_v48, %v1097_v44 }
 0x27f   :  { %v1472_v1 = vpack.c.bf16 %v1098_v54, %v1096_v32 }
 0x280   :  { %v937_v34 = vpop.f32.mrf.mxu0 }
 0x281   :  { %1532 = vst [vmem:[#allocation2 + $0x20] sm:$0xff] %v1472_v1   ;;  %v938_v17 = vadd.f32 %v2056_v22, %v937_v34 }
 0x283   :  { %v977_v38 = vmax.f32 %v938_v17, 0.0 }
 0x284   :  { %v1100_v39 = vpop.f32.mrf.mxu1 }
 0x285   :  { %v995_v47 = vpack.c.bf16 %v977_v38, %v976_v36  ;;  %v1101_v46 = vadd.f32 %v2093_v48, %v1100_v39 }
 0x287   :  { %1139 = vmatmul.bf16.gmra.mxu1 %v995_v47 }
 0x288   :  { %v940_v42 = vpop.f32.mrf.mxu0 }
 0x289   :  { %v941_v62 = vadd.f32 %v2056_v22, %v940_v42 }
 0x28b   :  { %v978_v55 = vmax.f32 %v941_v62, 0.0 }
 0x28c   :  { %v1102_v43 = vpop.f32.mrf.mxu1 }
 0x28d   :  { %v1103_v28 = vadd.f32 %v2093_v48, %v1102_v43 }
 0x28f   :  { %v1477_v49 = vpack.c.bf16 %v1103_v28, %v1101_v46 }
 0x290   :  { %v942_v12 = vpop.f32.mrf.mxu0 }
 0x291   :  { %1533 = vst [vmem:[#allocation2 + $0x28] sm:$0xff] %v1477_v49   ;;  %v943_v52 = vadd.f32 %v2056_v22, %v942_v12 }
 0x293   :  { %v979_v56 = vmax.f32 %v943_v52, 0.0 }
 0x294   :  { %v1105_v57 = vpop.f32.mrf.mxu1 }
 0x295   :  { %v996_v24 = vpack.c.bf16 %v979_v56, %v978_v55  ;;  %v1106_v35 = vadd.f32 %v2093_v48, %v1105_v57 }
 0x297   :  { %1144 = vmatmul.bf16.gmra.mxu1 %v996_v24 }
 0x29c   :  { %v1107_v58 = vpop.f32.mrf.mxu1 }
 0x29d   :  { %v1108_v59 = vadd.f32 %v2093_v48, %v1107_v58 }
 0x29e   :  { %v945_v11 = vpop.f32.mrf.mxu2 }
 0x29f   :  { %v1482_v60 = vpack.c.bf16 %v1108_v59, %v1106_v35  ;;  %v946_v63 = vadd.f32 %v2056_v22, %v945_v11 }
 0x2a1   :  { %1534 = vst [vmem:[#allocation2 + $0x30] sm:$0xff] %v1482_v60   ;;  %v980_v37 = vmax.f32 %v946_v63, 0.0 }
 0x2a4   :  { %v1110_v61 = vpop.f32.mrf.mxu1 }
 0x2a5   :  { %v1111_v4 = vadd.f32 %v2093_v48, %v1110_v61 }
 0x2a6   :  { %v947_v41 = vpop.f32.mrf.mxu2 }
 0x2a7   :  { %v948_v2 = vadd.f32 %v2056_v22, %v947_v41 }
 0x2a9   :  { %v981_v3 = vmax.f32 %v948_v2, 0.0 }
 0x2ab   :  { %v997_v16 = vpack.c.bf16 %v981_v3, %v980_v37 }
 0x2ac   :  { %v1112_v50 = vpop.f32.mrf.mxu1 }
 0x2ad   :  { %v1113_v53 = vadd.f32 %v2093_v48, %v1112_v50  ;;  %1149 = vmatmul.bf16.gmra.mxu1 %v997_v16 }
 0x2af   :  { %v1487_v5 = vpack.c.bf16 %v1113_v53, %v1111_v4 }
 0x2b1   :  { %1535 = vst [vmem:[#allocation2 + $0x38] sm:$0xff] %v1487_v5  }
 0x2b4   :  { %v1115_v6 = vpop.f32.mrf.mxu1 }
 0x2b5   :  { %v1116_v9 = vadd.f32 %v2093_v48, %v1115_v6 }
 0x2bc   :  { %v1117_v8 = vpop.f32.mrf.mxu1 }
 0x2bd   :  { %v1118_v23 = vadd.f32 %v2093_v48, %v1117_v8 }
 0x2bf   :  { %v1492_v51 = vpack.c.bf16 %v1118_v23, %v1116_v9 }
 0x2c1   :  { %1536 = vst [vmem:[#allocation2 + $0x40] sm:$0xff] %v1492_v51  }
 0x2c4   :  { %v1120_v22 = vpop.f32.mrf.mxu1 }
 0x2c5   :  { %v1121_v7 = vadd.f32 %v2093_v48, %v1120_v22 }
 0x2cc   :  { %v1122_v10 = vpop.f32.mrf.mxu1 }
 0x2cd   :  { %v1123_v45 = vadd.f32 %v2093_v48, %v1122_v10 }
 0x2cf   :  { %v1497_v40 = vpack.c.bf16 %v1123_v45, %v1121_v7 }
 0x2d1   :  { %1537 = vst [vmem:[#allocation2 + $0x48] sm:$0xff] %v1497_v40  }
 0x2d4   :  { %v1125_v13 = vpop.f32.mrf.mxu1 }
 0x2d5   :  { %v1126_v18 = vadd.f32 %v2093_v48, %v1125_v13 }
 0x2dc   :  { %v1127_v14 = vpop.f32.mrf.mxu1 }
 0x2dd   :  { %v1128_v19 = vadd.f32 %v2093_v48, %v1127_v14 }
 0x2df   :  { %v1502_v20 = vpack.c.bf16 %v1128_v19, %v1126_v18 }
 0x2e1   :  { %1538 = vst [vmem:[#allocation2 + $0x50] sm:$0xff] %v1502_v20  }
 0x2e4   :  { %v1130_v21 = vpop.f32.mrf.mxu1 }
 0x2e5   :  { %v1131_v15 = vadd.f32 %v2093_v48, %v1130_v21 }
 0x2ec   :  { %v1132_v26 = vpop.f32.mrf.mxu1 }
 0x2ed   :  { %v1133_v27 = vadd.f32 %v2093_v48, %v1132_v26 }
 0x2ef   :  { %v1507_v0 = vpack.c.bf16 %v1133_v27, %v1131_v15 }
 0x2f1   :  { %1539 = vst [vmem:[#allocation2 + $0x58] sm:$0xff] %v1507_v0  }
 0x2f4   :  { %v1135_v29 = vpop.f32.mrf.mxu1 }
 0x2f5   :  { %v1136_v25 = vadd.f32 %v2093_v48, %v1135_v29 }
 0x2fc   :  { %v1137_v30 = vpop.f32.mrf.mxu1 }
 0x2fd   :  { %v1138_v31 = vadd.f32 %v2093_v48, %v1137_v30 }
 0x2ff   :  { %v1512_v44 = vpack.c.bf16 %v1138_v31, %v1136_v25 }
 0x301   :  { %1540 = vst [vmem:[#allocation2 + $0x60] sm:$0xff] %v1512_v44  }
 0x304   :  { %v1140_v32 = vpop.f32.mrf.mxu1 }
 0x305   :  { %v1141_v33 = vadd.f32 %v2093_v48, %v1140_v32 }
 0x30c   :  { %v1142_v54 = vpop.f32.mrf.mxu1 }
 0x30d   :  { %v1143_v1 = vadd.f32 %v2093_v48, %v1142_v54 }
 0x30f   :  { %v1517_v34 = vpack.c.bf16 %v1143_v1, %v1141_v33 }
 0x311   :  { %1541 = vst [vmem:[#allocation2 + $0x68] sm:$0xff] %v1517_v34  }
 0x314   :  { %v1145_v17 = vpop.f32.mrf.mxu1 }
 0x315   :  { %v1146_v38 = vadd.f32 %v2093_v48, %v1145_v17 }
 0x31c   :  { %v1147_v36 = vpop.f32.mrf.mxu1 }
 0x31d   :  { %v1148_v39 = vadd.f32 %v2093_v48, %v1147_v36 }
 0x31f   :  { %v1522_v47 = vpack.c.bf16 %v1148_v39, %v1146_v38 }
 0x321   :  { %1542 = vst [vmem:[#allocation2 + $0x70] sm:$0xff] %v1522_v47  }
 0x32a   :  { %v1150_v42 = vpop.f32.mrf.mxu1 }
 0x32b   :  { %v1151_v46 = vadd.f32 %v2093_v48, %v1150_v42 }
 0x332   :  { %v1152_v43 = vpop.f32.mrf.mxu1 }
 0x333   :  { %v1153_v28 = vadd.f32 %v2093_v48, %v1152_v43 }
 0x335   :  { %v1527_v62 = vpack.c.bf16 %v1153_v28, %v1151_v46 }
 0x337   :  { %1543 = vst [vmem:[#allocation2 + $0x78] sm:$0xff] %v1527_v62  }
 0x338   :  { %1231 = dma.vmem_to_hbm [thread:$0]  %s1224_s19, 2048, %s1226_s22, [#allocation3], %s1589_s23, %s1589_s23, %s1590_s24  }
 0x339   :  { %1586 = dma.done.wait [#allocation3], 2048  }
 0x33a   :  { %1587 = vsyncadd [#allocation3], 4294965248 }
 0x33b   :  { %1236 = vsyncpa [#allocation3], 1 }

</bundles_post_ra>
